<compile_context>
chip_gen: v6e
topology: v6e:2x2x1
jax: 0.10.0
libtpu: 0.0.40
codegen_flags: <defaults>
</compile_context>

<pallas_src>
import jax
import jax.numpy as jnp
from jax.experimental import pallas as pl
from jax.experimental.pallas import tpu as pltpu

LN_EPS = 1e-5   # PyTorch nn.LayerNorm default
HID = 512       # BNN hidden width (fixed by the module)


def _round_up(x, m):
    return ((x + m - 1) // m) * m


def _pick_batch_tile(B):
    """Batch tile: big enough to amortize per-step overhead, small enough to
    always give >=2 grid steps for mid/large batches (v7x has 2 TensorCores)."""
    if B >= 1024:
        return 512
    if B >= 32:
        return _round_up(pl.cdiv(B, 2), 16)   # two (or more) tiles
    return 16                                  # tiny batches: one ragged tile


def _vmem_limit_bytes(tb, h, x_itemsize):
    batched = tb * h * x_itemsize + tb * 4                 # feature tile in + prob column out
    resident = h * HID * 2 + HID * HID * 2 + 8 * HID * 4   # bf16 w1, bf16 w2, packed f32 params
    total = 2 * batched + resident + (2 << 20)             # 2x batched bufs, 1x resident, slack
    # stay comfortably below v7x's 64 MiB physical VMEM; plenty on v5e/v6e
    return int(min(max(total, 4 << 20), 48 << 20))


def _layernorm(h, gamma, beta):
    """One-pass LN stats with gamma folded into the scale (PyTorch-equivalent math)."""
    mu = jnp.mean(h, axis=-1, keepdims=True)
    ms = jnp.mean(h * h, axis=-1, keepdims=True)
    scale = gamma * jax.lax.rsqrt(ms - mu * mu + LN_EPS)
    return h * scale + (beta - mu * scale)


def safety_guard_router_kernel(x_ref, w1_ref, w2_ref, p_ref, out_ref):
    # x_ref : [TB, H]   features (any float dtype; cast fused here)
    # w1_ref: [H, HID]  bf16     (resident, single-buffered)
    # w2_ref: [HID,HID] bf16     (resident, single-buffered)
    # p_ref : [8, HID]  f32 packed rows: b1,g1,be1,b2,g2,be2,w3,(b3 broadcast)
    # out_ref:[TB, 1]   f32 routing probability column
    x = x_ref[...].astype(jnp.bfloat16)   # no-op if the producer already emits bf16

    p = p_ref[...]
    b1, g1, be1 = p[0:1, :], p[1:2, :], p[2:3, :]
    b2, g2, be2 = p[3:4, :], p[4:5, :], p[5:6, :]
    w3_row = p[6:7, :]
    b3 = p[7:8, 0:1]                       # row 7 is b3 broadcast across lanes

    # Linear(H->512) -> LayerNorm -> ReLU   (bf16 MXU dot, f32 accumulation/stats)
    h = jnp.dot(x, w1_ref[...], preferred_element_type=jnp.float32) + b1
    h = _layernorm(h, g1, be1)
    h = jnp.maximum(h, 0.0).astype(jnp.bfloat16)   # bf16 feed to second MXU dot
    # TODO(synk): on v6e/v7x the affine+ReLU above could run in packed bf16
    #             (stats stay f32) for a few-% VALU win; kept f32 so the same
    #             kernel also serves v5e (no bf16 VALU path) at full precision.

    # Linear(512->512) -> LayerNorm -> ReLU
    h = jnp.dot(h, w2_ref[...], preferred_element_type=jnp.float32) + b2
    h = _layernorm(h, g2, be2)
    h = jnp.maximum(h, 0.0)

    # 512 -> 1 head: VPU multiply + lane reduce (avoids an N=1 MXU matmul)
    logit = jnp.sum(h * w3_row, axis=-1, keepdims=True) + b3      # [TB, 1]
    out_ref[...] = jax.nn.sigmoid(logit)


def _pallas_route(features, w1_bf, w2_bf, pvec, TB, single_buffer_weights):
    B, H = features.shape
    if single_buffer_weights:
        resident = lambda shape: pl.BlockSpec(shape, lambda i: (0, 0),
                                              pipeline_mode=pl.Buffered(1))
    else:
        resident = lambda shape: pl.BlockSpec(shape, lambda i: (0, 0))

    return pl.pallas_call(
        safety_guard_router_kernel,
        out_shape=jax.ShapeDtypeStruct((B, 1), jnp.float32),
        grid=(pl.cdiv(B, TB),),            # ragged last tile handled by Pallas clipping
        in_specs=[
            pl.BlockSpec((TB, H), lambda i: (i, 0)),   # batched features (double-buffered)
            resident((H, HID)),                        # w1 (bf16)
            resident((HID, HID)),                      # w2 (bf16)
            resident((8, HID)),                        # packed small f32 params
        ],
        out_specs=pl.BlockSpec((TB, 1), lambda i: (i, 0)),
        compiler_params=pltpu.CompilerParams(
            dimension_semantics=("parallel",),
            vmem_limit_bytes=_vmem_limit_bytes(TB, H, features.dtype.itemsize),
        ),
    )(features, w1_bf, w2_bf, pvec)


def safety_guard_route(features, safe_unsafe_logits, kernel_params):
    """features: [B,H] float; safe_unsafe_logits: [B,2] (safe, unsafe) logits.
    kernel_params: output of prepare_router_params (frozen, pre-cast/packed)."""
    B, H = features.shape
    w1_bf, w2_bf, pvec = kernel_params
    TB = _pick_batch_tile(B)

    try:
        out = _pallas_route(features, w1_bf, w2_bf, pvec, TB, single_buffer_weights=True)
    except Exception:
        # Fallback for runtimes without pipeline_mode support: identical math,
        # resident weights simply stay double-buffered.
        out = _pallas_route(features, w1_bf, w2_bf, pvec, TB, single_buffer_weights=False)

    routing_probs = out[:, 0]
    large_mask = (routing_probs > 0.5).astype(jnp.int32)        # free in XLA wrapper
    lg = safe_unsafe_logits.astype(jnp.float32)
    small_probs = jax.nn.sigmoid(lg[:, 1] - lg[:, 0])           # == exp(log_softmax)[:,1]
    return routing_probs, large_mask, small_probs


def prepare_router_params(params):
    """ONE-TIME prep of the frozen router params (done at load time, not per call):
    bf16 matmul weights + a single packed [8, HID] f32 array of the small vectors."""
    (w1, b1, g1, be1, w2, b2, g2, be2, w3, b3) = params
    pvec = jnp.stack([
        b1.reshape(HID), g1.reshape(HID), be1.reshape(HID),
        b2.reshape(HID), g2.reshape(HID), be2.reshape(HID),
        w3.reshape(HID),
        jnp.broadcast_to(jnp.asarray(b3, jnp.float32).reshape(()), (HID,)),
    ]).astype(jnp.float32)
    return (w1.astype(jnp.bfloat16), w2.astype(jnp.bfloat16), pvec)


def init_router_params(key, input_dim):
    """Deterministic BNN router params (eval mode: frozen weight_mu / bias_mu only)."""
    k1, k2, k3 = jax.random.split(key, 3)
    # kaiming_normal_ on weight_mu: std = sqrt(2 / fan_in)
    w1 = jax.random.normal(k1, (input_dim, HID), jnp.float32) * jnp.sqrt(2.0 / input_dim)
    w2 = jax.random.normal(k2, (HID, HID), jnp.float32) * jnp.sqrt(2.0 / HID)
    w3 = jax.random.normal(k3, (HID, 1), jnp.float32) * jnp.sqrt(2.0 / HID)
    b1 = jnp.zeros((1, HID), jnp.float32)
    b2 = jnp.zeros((1, HID), jnp.float32)
    b3 = jnp.zeros((1, 1), jnp.float32)
    g1 = jnp.ones((1, HID), jnp.float32)
    be1 = jnp.zeros((1, HID), jnp.float32)
    g2 = jnp.ones((1, HID), jnp.float32)
    be2 = jnp.zeros((1, HID), jnp.float32)
    return (w1, b1, g1, be1, w2, b2, g2, be2, w3, b3)


def reference_route(features, logits2, params):
    """Pure f32 JAX reference matching the PyTorch module's forward math."""
    (w1, b1, g1, be1, w2, b2, g2, be2, w3, b3) = params
    h = features @ w1 + b1
    h = (h - h.mean(-1, keepdims=True)) / jnp.sqrt(h.var(-1, keepdims=True) + LN_EPS) * g1 + be1
    h = jnp.maximum(h, 0.0)
    h = h @ w2 + b2
    h = (h - h.mean(-1, keepdims=True)) / jnp.sqrt(h.var(-1, keepdims=True) + LN_EPS) * g2 + be2
    h = jnp.maximum(h, 0.0)
    logit = (h @ w3 + b3)[:, 0]
    p_route = jax.nn.sigmoid(logit)
    p_unsafe = jnp.exp(jax.nn.log_softmax(logits2, axis=-1))[:, 1]
    return p_route, (p_route > 0.5).astype(jnp.int32), p_unsafe


if __name__ == "__main__":
    B = 8          # batch of prompts
    H = 128        # small-model hidden size (real LlamaGuard-3-8B: 4096)

    key = jax.random.PRNGKey(0)
    kf, kl, kp = jax.random.split(key, 3)

    # "small model" outputs: last-hidden-state features and [safe, unsafe] logits
    features = jax.random.normal(kf, (B, H), jnp.float32)
    safe_unsafe_logits = jax.random.normal(kl, (B, 2), jnp.float32) * 3.0

    params = init_router_params(kp, H)
    kernel_params = prepare_router_params(params)   # one-time cast/pack (frozen weights)

    routing_probs, large_mask, small_probs = jax.block_until_ready(
        safety_guard_route(features, safe_unsafe_logits, kernel_params)
    )

    # correctness check against the f32 plain-JAX reference
    ref_p, ref_m, ref_s = reference_route(features, safe_unsafe_logits, params)

    assert routing_probs.shape == (B,) and small_probs.shape == (B,)
    # router matmuls run in bf16 -> loose tolerance on routing probabilities;
    # the >0.5 mask must agree except where the reference prob is borderline.
    assert jnp.allclose(routing_probs, ref_p, atol=3e-2, rtol=3e-2), (routing_probs, ref_p)
    assert bool(jnp.all((large_mask == ref_m) | (jnp.abs(ref_p - 0.5) < 3e-2)))
    # small-model unsafe prob is exact f32 math (sigmoid of the logit difference)
    assert jnp.allclose(small_probs, ref_s, atol=1e-5, rtol=1e-5), (small_probs, ref_s)

    print("KERNEL_OK")
</pallas_src>

<mosaic_0001>
module attributes {stable_mosaic.version = 11 : i64} {
  func.func @safety_guard_router_kernel(%arg0: i32, %arg1: memref<16x128xf32, #tpu.memory_space<vmem>>, %arg2: memref<128x512xbf16, #tpu.memory_space<vmem>>, %arg3: memref<512x512xbf16, #tpu.memory_space<vmem>>, %arg4: memref<8x512xf32, #tpu.memory_space<vmem>>, %arg5: memref<16x1xf32, #tpu.memory_space<vmem>>) attributes {dimension_semantics = [#tpu.dimension_semantics<parallel>], iteration_bounds = array<i64: 1>, scalar_prefetch = 0 : i64, scratch_operands = 0 : i64, tpu.core_type = #tpu.core_type<tc>, window_params = [{transform_indices = @transform_0, window_bounds = array<i64: 16, 128>}, {pipeline_mode = #tpu.pipeline_mode<synchronous>, transform_indices = @transform_1, window_bounds = array<i64: 128, 512>}, {pipeline_mode = #tpu.pipeline_mode<synchronous>, transform_indices = @transform_2, window_bounds = array<i64: 512, 512>}, {pipeline_mode = #tpu.pipeline_mode<synchronous>, transform_indices = @transform_3, window_bounds = array<i64: 8, 512>}, {transform_indices = @transform_4, window_bounds = array<i64: 16, 1>}]} {
    %c0 = arith.constant 0 : index
    %c0_0 = arith.constant 0 : index
    %0 = vector.load %arg1[%c0, %c0_0] : memref<16x128xf32, #tpu.memory_space<vmem>>, vector<16x128xf32>
    %1 = arith.truncf %0 : vector<16x128xf32> to vector<16x128xbf16>
    %c0_1 = arith.constant 0 : index
    %c0_2 = arith.constant 0 : index
    %2 = vector.load %arg4[%c0_1, %c0_2] : memref<8x512xf32, #tpu.memory_space<vmem>>, vector<8x512xf32>
    %3 = vector.extract_strided_slice %2 {offsets = [0, 0], sizes = [1, 512], strides = [1, 1]} : vector<8x512xf32> to vector<1x512xf32>
    %4 = vector.extract_strided_slice %2 {offsets = [1, 0], sizes = [1, 512], strides = [1, 1]} : vector<8x512xf32> to vector<1x512xf32>
    %5 = vector.extract_strided_slice %2 {offsets = [2, 0], sizes = [1, 512], strides = [1, 1]} : vector<8x512xf32> to vector<1x512xf32>
    %6 = vector.extract_strided_slice %2 {offsets = [3, 0], sizes = [1, 512], strides = [1, 1]} : vector<8x512xf32> to vector<1x512xf32>
    %7 = vector.extract_strided_slice %2 {offsets = [4, 0], sizes = [1, 512], strides = [1, 1]} : vector<8x512xf32> to vector<1x512xf32>
    %8 = vector.extract_strided_slice %2 {offsets = [5, 0], sizes = [1, 512], strides = [1, 1]} : vector<8x512xf32> to vector<1x512xf32>
    %9 = vector.extract_strided_slice %2 {offsets = [6, 0], sizes = [1, 512], strides = [1, 1]} : vector<8x512xf32> to vector<1x512xf32>
    %10 = vector.extract_strided_slice %2 {offsets = [7, 0], sizes = [1, 1], strides = [1, 1]} : vector<8x512xf32> to vector<1x1xf32>
    %c0_3 = arith.constant 0 : index
    %c0_4 = arith.constant 0 : index
    %11 = vector.load %arg2[%c0_3, %c0_4] : memref<128x512xbf16, #tpu.memory_space<vmem>>, vector<128x512xbf16>
    %cst = arith.constant dense<0.000000e+00> : vector<16x512xf32>
    %12 = tpu.matmul %1, %11, %cst {dimension_numbers = #tpu.dot_dimension_numbers<[1], [0], [0], [1], [0, 0, 1, 1], [], []>} : vector<16x128xbf16>, vector<128x512xbf16>, vector<16x512xf32> -> vector<16x512xf32>
    %13 = vector.broadcast %3 : vector<1x512xf32> to vector<16x512xf32>
    %14 = arith.addf %12, %13 : vector<16x512xf32>
    %cst_5 = arith.constant dense<0.000000e+00> : vector<16xf32>
    %15 = vector.multi_reduction <add>, %14, %cst_5 [1] : vector<16x512xf32> to vector<16xf32>
    %16 = vector.shape_cast %15 : vector<16xf32> to vector<16x1xf32>
    %cst_6 = arith.constant 5.120000e+02 : f32
    %17 = vector.broadcast %cst_6 : f32 to vector<16x1xf32>
    %18 = arith.divf %16, %17 : vector<16x1xf32>
    %19 = arith.mulf %14, %14 : vector<16x512xf32>
    %cst_7 = arith.constant dense<0.000000e+00> : vector<16xf32>
    %20 = vector.multi_reduction <add>, %19, %cst_7 [1] : vector<16x512xf32> to vector<16xf32>
    %21 = vector.shape_cast %20 : vector<16xf32> to vector<16x1xf32>
    %cst_8 = arith.constant 5.120000e+02 : f32
    %22 = vector.broadcast %cst_8 : f32 to vector<16x1xf32>
    %23 = arith.divf %21, %22 : vector<16x1xf32>
    %24 = arith.mulf %18, %18 : vector<16x1xf32>
    %25 = arith.subf %23, %24 : vector<16x1xf32>
    %cst_9 = arith.constant 9.99999974E-6 : f32
    %26 = vector.broadcast %cst_9 : f32 to vector<16x1xf32>
    %27 = arith.addf %25, %26 : vector<16x1xf32>
    %28 = math.rsqrt %27 : vector<16x1xf32>
    %29 = vector.broadcast %4 : vector<1x512xf32> to vector<16x512xf32>
    %30 = vector.broadcast %28 : vector<16x1xf32> to vector<16x512xf32>
    %31 = arith.mulf %29, %30 : vector<16x512xf32>
    %32 = arith.mulf %14, %31 : vector<16x512xf32>
    %33 = vector.broadcast %18 : vector<16x1xf32> to vector<16x512xf32>
    %34 = arith.mulf %33, %31 : vector<16x512xf32>
    %35 = vector.broadcast %5 : vector<1x512xf32> to vector<16x512xf32>
    %36 = arith.subf %35, %34 : vector<16x512xf32>
    %37 = arith.addf %32, %36 : vector<16x512xf32>
    %cst_10 = arith.constant 0.000000e+00 : f32
    %38 = vector.broadcast %cst_10 : f32 to vector<16x512xf32>
    %39 = arith.maximumf %37, %38 : vector<16x512xf32>
    %40 = arith.truncf %39 : vector<16x512xf32> to vector<16x512xbf16>
    %c0_11 = arith.constant 0 : index
    %c0_12 = arith.constant 0 : index
    %41 = vector.load %arg3[%c0_11, %c0_12] : memref<512x512xbf16, #tpu.memory_space<vmem>>, vector<512x512xbf16>
    %cst_13 = arith.constant dense<0.000000e+00> : vector<16x512xf32>
    %42 = tpu.matmul %40, %41, %cst_13 {dimension_numbers = #tpu.dot_dimension_numbers<[1], [0], [0], [1], [0, 0, 1, 1], [], []>} : vector<16x512xbf16>, vector<512x512xbf16>, vector<16x512xf32> -> vector<16x512xf32>
    %43 = vector.broadcast %6 : vector<1x512xf32> to vector<16x512xf32>
    %44 = arith.addf %42, %43 : vector<16x512xf32>
    %cst_14 = arith.constant dense<0.000000e+00> : vector<16xf32>
    %45 = vector.multi_reduction <add>, %44, %cst_14 [1] : vector<16x512xf32> to vector<16xf32>
    %46 = vector.shape_cast %45 : vector<16xf32> to vector<16x1xf32>
    %cst_15 = arith.constant 5.120000e+02 : f32
    %47 = vector.broadcast %cst_15 : f32 to vector<16x1xf32>
    %48 = arith.divf %46, %47 : vector<16x1xf32>
    %49 = arith.mulf %44, %44 : vector<16x512xf32>
    %cst_16 = arith.constant dense<0.000000e+00> : vector<16xf32>
    %50 = vector.multi_reduction <add>, %49, %cst_16 [1] : vector<16x512xf32> to vector<16xf32>
    %51 = vector.shape_cast %50 : vector<16xf32> to vector<16x1xf32>
    %cst_17 = arith.constant 5.120000e+02 : f32
    %52 = vector.broadcast %cst_17 : f32 to vector<16x1xf32>
    %53 = arith.divf %51, %52 : vector<16x1xf32>
    %54 = arith.mulf %48, %48 : vector<16x1xf32>
    %55 = arith.subf %53, %54 : vector<16x1xf32>
    %cst_18 = arith.constant 9.99999974E-6 : f32
    %56 = vector.broadcast %cst_18 : f32 to vector<16x1xf32>
    %57 = arith.addf %55, %56 : vector<16x1xf32>
    %58 = math.rsqrt %57 : vector<16x1xf32>
    %59 = vector.broadcast %7 : vector<1x512xf32> to vector<16x512xf32>
    %60 = vector.broadcast %58 : vector<16x1xf32> to vector<16x512xf32>
    %61 = arith.mulf %59, %60 : vector<16x512xf32>
    %62 = arith.mulf %44, %61 : vector<16x512xf32>
    %63 = vector.broadcast %48 : vector<16x1xf32> to vector<16x512xf32>
    %64 = arith.mulf %63, %61 : vector<16x512xf32>
    %65 = vector.broadcast %8 : vector<1x512xf32> to vector<16x512xf32>
    %66 = arith.subf %65, %64 : vector<16x512xf32>
    %67 = arith.addf %62, %66 : vector<16x512xf32>
    %cst_19 = arith.constant 0.000000e+00 : f32
    %68 = vector.broadcast %cst_19 : f32 to vector<16x512xf32>
    %69 = arith.maximumf %67, %68 : vector<16x512xf32>
    %70 = vector.broadcast %9 : vector<1x512xf32> to vector<16x512xf32>
    %71 = arith.mulf %69, %70 : vector<16x512xf32>
    %cst_20 = arith.constant dense<0.000000e+00> : vector<16xf32>
    %72 = vector.multi_reduction <add>, %71, %cst_20 [1] : vector<16x512xf32> to vector<16xf32>
    %73 = vector.shape_cast %72 : vector<16xf32> to vector<16x1xf32>
    %74 = vector.broadcast %10 : vector<1x1xf32> to vector<16x1xf32>
    %75 = arith.addf %73, %74 : vector<16x1xf32>
    %76 = arith.negf %75 : vector<16x1xf32>
    %77 = math.exp %76 : vector<16x1xf32>
    %cst_21 = arith.constant 1.000000e+00 : f32
    %78 = vector.broadcast %cst_21 : f32 to vector<16x1xf32>
    %79 = arith.addf %78, %77 : vector<16x1xf32>
    %80 = arith.divf %78, %79 : vector<16x1xf32>
    %c0_22 = arith.constant 0 : index
    %c0_23 = arith.constant 0 : index
    %81 = vector.load %arg5[%c0_22, %c0_23] : memref<16x1xf32, #tpu.memory_space<vmem>>, vector<16x1xf32>
    tpu.vector_store %arg5[%c0_22, %c0_23], %80 {strides = array<i32>} : memref<16x1xf32, #tpu.memory_space<vmem>>, vector<16x1xf32>,
    return
  }
  func.func @transform_0(%arg0: i32) -> (i32, i32) {
    %c0_i32 = arith.constant 0 : i32
    %c0_i32_0 = arith.constant 0 : i32
    return %arg0, %c0_i32 : i32, i32
  }
  func.func @transform_1(%arg0: i32) -> (i32, i32) {
    %c0_i32 = arith.constant 0 : i32
    %c0_i32_0 = arith.constant 0 : i32
    %c0_i32_1 = arith.constant 0 : i32
    return %c0_i32, %c0_i32_0 : i32, i32
  }
  func.func @transform_2(%arg0: i32) -> (i32, i32) {
    %c0_i32 = arith.constant 0 : i32
    %c0_i32_0 = arith.constant 0 : i32
    %c0_i32_1 = arith.constant 0 : i32
    return %c0_i32, %c0_i32_0 : i32, i32
  }
  func.func @transform_3(%arg0: i32) -> (i32, i32) {
    %c0_i32 = arith.constant 0 : i32
    %c0_i32_0 = arith.constant 0 : i32
    %c0_i32_1 = arith.constant 0 : i32
    return %c0_i32, %c0_i32_0 : i32, i32
  }
  func.func @transform_4(%arg0: i32) -> (i32, i32) {
    %c0_i32 = arith.constant 0 : i32
    %c0_i32_0 = arith.constant 0 : i32
    return %arg0, %c0_i32 : i32, i32
  }
}

module attributes {stable_mosaic.version = 11 : i64} {
  func.func @safety_guard_router_kernel(%arg0: i32, %arg1: memref<16x128xf32, #tpu.memory_space<vmem>>, %arg2: memref<128x512xbf16, #tpu.memory_space<vmem>>, %arg3: memref<512x512xbf16, #tpu.memory_space<vmem>>, %arg4: memref<8x512xf32, #tpu.memory_space<vmem>>, %arg5: memref<16x1xf32, #tpu.memory_space<vmem>>) attributes {dimension_semantics = [#tpu.dimension_semantics<parallel>], iteration_bounds = array<i64: 1>, scalar_prefetch = 0 : i64, scratch_operands = 0 : i64, tpu.core_type = #tpu.core_type<tc>, window_params = [{transform_indices = @transform_0, window_bounds = array<i64: 16, 128>}, {pipeline_mode = #tpu.pipeline_mode<synchronous>, transform_indices = @transform_1, window_bounds = array<i64: 128, 512>}, {pipeline_mode = #tpu.pipeline_mode<synchronous>, transform_indices = @transform_2, window_bounds = array<i64: 512, 512>}, {pipeline_mode = #tpu.pipeline_mode<synchronous>, transform_indices = @transform_3, window_bounds = array<i64: 8, 512>}, {transform_indices = @transform_4, window_bounds = array<i64: 16, 1>}]} {
    %c0 = arith.constant 0 : index
    %c0_0 = arith.constant 0 : index
    %0 = vector.load %arg1[%c0, %c0_0] : memref<16x128xf32, #tpu.memory_space<vmem>>, vector<16x128xf32>
    %1 = arith.truncf %0 : vector<16x128xf32> to vector<16x128xbf16>
    %c0_1 = arith.constant 0 : index
    %c0_2 = arith.constant 0 : index
    %2 = vector.load %arg4[%c0_1, %c0_2] : memref<8x512xf32, #tpu.memory_space<vmem>>, vector<8x512xf32>
    %3 = vector.extract_strided_slice %2 {offsets = [0, 0], sizes = [1, 512], strides = [1, 1]} : vector<8x512xf32> to vector<1x512xf32>
    %4 = vector.extract_strided_slice %2 {offsets = [1, 0], sizes = [1, 512], strides = [1, 1]} : vector<8x512xf32> to vector<1x512xf32>
    %5 = vector.extract_strided_slice %2 {offsets = [2, 0], sizes = [1, 512], strides = [1, 1]} : vector<8x512xf32> to vector<1x512xf32>
    %6 = vector.extract_strided_slice %2 {offsets = [3, 0], sizes = [1, 512], strides = [1, 1]} : vector<8x512xf32> to vector<1x512xf32>
    %7 = vector.extract_strided_slice %2 {offsets = [4, 0], sizes = [1, 512], strides = [1, 1]} : vector<8x512xf32> to vector<1x512xf32>
    %8 = vector.extract_strided_slice %2 {offsets = [5, 0], sizes = [1, 512], strides = [1, 1]} : vector<8x512xf32> to vector<1x512xf32>
    %9 = vector.extract_strided_slice %2 {offsets = [6, 0], sizes = [1, 512], strides = [1, 1]} : vector<8x512xf32> to vector<1x512xf32>
    %10 = vector.extract_strided_slice %2 {offsets = [7, 0], sizes = [1, 1], strides = [1, 1]} : vector<8x512xf32> to vector<1x1xf32>
    %c0_3 = arith.constant 0 : index
    %c0_4 = arith.constant 0 : index
    %11 = vector.load %arg2[%c0_3, %c0_4] : memref<128x512xbf16, #tpu.memory_space<vmem>>, vector<128x512xbf16>
    %cst = arith.constant dense<0.000000e+00> : vector<16x512xf32>
    %12 = tpu.matmul %1, %11, %cst {dimension_numbers = #tpu.dot_dimension_numbers<[1], [0], [0], [1], [0, 0, 1, 1], [], []>} : vector<16x128xbf16>, vector<128x512xbf16>, vector<16x512xf32> -> vector<16x512xf32>
    %13 = vector.broadcast %3 : vector<1x512xf32> to vector<16x512xf32>
    %14 = arith.addf %12, %13 : vector<16x512xf32>
    %cst_5 = arith.constant dense<0.000000e+00> : vector<16xf32>
    %15 = vector.multi_reduction <add>, %14, %cst_5 [1] : vector<16x512xf32> to vector<16xf32>
    %16 = vector.shape_cast %15 : vector<16xf32> to vector<16x1xf32>
    %cst_6 = arith.constant 5.120000e+02 : f32
    %17 = vector.broadcast %cst_6 : f32 to vector<16x1xf32>
    %18 = arith.divf %16, %17 : vector<16x1xf32>
    %19 = arith.mulf %14, %14 : vector<16x512xf32>
    %cst_7 = arith.constant dense<0.000000e+00> : vector<16xf32>
    %20 = vector.multi_reduction <add>, %19, %cst_7 [1] : vector<16x512xf32> to vector<16xf32>
    %21 = vector.shape_cast %20 : vector<16xf32> to vector<16x1xf32>
    %cst_8 = arith.constant 5.120000e+02 : f32
    %22 = vector.broadcast %cst_8 : f32 to vector<16x1xf32>
    %23 = arith.divf %21, %22 : vector<16x1xf32>
    %24 = arith.mulf %18, %18 : vector<16x1xf32>
    %25 = arith.subf %23, %24 : vector<16x1xf32>
    %cst_9 = arith.constant 9.99999974E-6 : f32
    %26 = vector.broadcast %cst_9 : f32 to vector<16x1xf32>
    %27 = arith.addf %25, %26 : vector<16x1xf32>
    %28 = math.rsqrt %27 : vector<16x1xf32>
    %29 = vector.broadcast %4 : vector<1x512xf32> to vector<16x512xf32>
    %30 = vector.broadcast %28 : vector<16x1xf32> to vector<16x512xf32>
    %31 = arith.mulf %29, %30 : vector<16x512xf32>
    %32 = arith.mulf %14, %31 : vector<16x512xf32>
    %33 = vector.broadcast %18 : vector<16x1xf32> to vector<16x512xf32>
    %34 = arith.mulf %33, %31 : vector<16x512xf32>
    %35 = vector.broadcast %5 : vector<1x512xf32> to vector<16x512xf32>
    %36 = arith.subf %35, %34 : vector<16x512xf32>
    %37 = arith.addf %32, %36 : vector<16x512xf32>
    %cst_10 = arith.constant 0.000000e+00 : f32
    %38 = vector.broadcast %cst_10 : f32 to vector<16x512xf32>
    %39 = arith.maximumf %37, %38 : vector<16x512xf32>
    %40 = arith.truncf %39 : vector<16x512xf32> to vector<16x512xbf16>
    %c0_11 = arith.constant 0 : index
    %c0_12 = arith.constant 0 : index
    %41 = vector.load %arg3[%c0_11, %c0_12] : memref<512x512xbf16, #tpu.memory_space<vmem>>, vector<512x512xbf16>
    %cst_13 = arith.constant dense<0.000000e+00> : vector<16x512xf32>
    %42 = tpu.matmul %40, %41, %cst_13 {dimension_numbers = #tpu.dot_dimension_numbers<[1], [0], [0], [1], [0, 0, 1, 1], [], []>} : vector<16x512xbf16>, vector<512x512xbf16>, vector<16x512xf32> -> vector<16x512xf32>
    %43 = vector.broadcast %6 : vector<1x512xf32> to vector<16x512xf32>
    %44 = arith.addf %42, %43 : vector<16x512xf32>
    %cst_14 = arith.constant dense<0.000000e+00> : vector<16xf32>
    %45 = vector.multi_reduction <add>, %44, %cst_14 [1] : vector<16x512xf32> to vector<16xf32>
    %46 = vector.shape_cast %45 : vector<16xf32> to vector<16x1xf32>
    %cst_15 = arith.constant 5.120000e+02 : f32
    %47 = vector.broadcast %cst_15 : f32 to vector<16x1xf32>
    %48 = arith.divf %46, %47 : vector<16x1xf32>
    %49 = arith.mulf %44, %44 : vector<16x512xf32>
    %cst_16 = arith.constant dense<0.000000e+00> : vector<16xf32>
    %50 = vector.multi_reduction <add>, %49, %cst_16 [1] : vector<16x512xf32> to vector<16xf32>
    %51 = vector.shape_cast %50 : vector<16xf32> to vector<16x1xf32>
    %cst_17 = arith.constant 5.120000e+02 : f32
    %52 = vector.broadcast %cst_17 : f32 to vector<16x1xf32>
    %53 = arith.divf %51, %52 : vector<16x1xf32>
    %54 = arith.mulf %48, %48 : vector<16x1xf32>
    %55 = arith.subf %53, %54 : vector<16x1xf32>
    %cst_18 = arith.constant 9.99999974E-6 : f32
    %56 = vector.broadcast %cst_18 : f32 to vector<16x1xf32>
    %57 = arith.addf %55, %56 : vector<16x1xf32>
    %58 = math.rsqrt %57 : vector<16x1xf32>
    %59 = vector.broadcast %7 : vector<1x512xf32> to vector<16x512xf32>
    %60 = vector.broadcast %58 : vector<16x1xf32> to vector<16x512xf32>
    %61 = arith.mulf %59, %60 : vector<16x512xf32>
    %62 = arith.mulf %44, %61 : vector<16x512xf32>
    %63 = vector.broadcast %48 : vector<16x1xf32> to vector<16x512xf32>
    %64 = arith.mulf %63, %61 : vector<16x512xf32>
    %65 = vector.broadcast %8 : vector<1x512xf32> to vector<16x512xf32>
    %66 = arith.subf %65, %64 : vector<16x512xf32>
    %67 = arith.addf %62, %66 : vector<16x512xf32>
    %cst_19 = arith.constant 0.000000e+00 : f32
    %68 = vector.broadcast %cst_19 : f32 to vector<16x512xf32>
    %69 = arith.maximumf %67, %68 : vector<16x512xf32>
    %70 = vector.broadcast %9 : vector<1x512xf32> to vector<16x512xf32>
    %71 = arith.mulf %69, %70 : vector<16x512xf32>
    %cst_20 = arith.constant dense<0.000000e+00> : vector<16xf32>
    %72 = vector.multi_reduction <add>, %71, %cst_20 [1] : vector<16x512xf32> to vector<16xf32>
    %73 = vector.shape_cast %72 : vector<16xf32> to vector<16x1xf32>
    %74 = vector.broadcast %10 : vector<1x1xf32> to vector<16x1xf32>
    %75 = arith.addf %73, %74 : vector<16x1xf32>
    %76 = arith.negf %75 : vector<16x1xf32>
    %77 = math.exp %76 : vector<16x1xf32>
    %cst_21 = arith.constant 1.000000e+00 : f32
    %78 = vector.broadcast %cst_21 : f32 to vector<16x1xf32>
    %79 = arith.addf %78, %77 : vector<16x1xf32>
    %80 = arith.divf %78, %79 : vector<16x1xf32>
    %c0_22 = arith.constant 0 : index
    %c0_23 = arith.constant 0 : index
    %81 = vector.load %arg5[%c0_22, %c0_23] : memref<16x1xf32, #tpu.memory_space<vmem>>, vector<16x1xf32>
    tpu.vector_store %arg5[%c0_22, %c0_23], %80 {strides = array<i32>} : memref<16x1xf32, #tpu.memory_space<vmem>>, vector<16x1xf32>,
    return
  }
  func.func @transform_0(%arg0: i32) -> (i32, i32) {
    %c0_i32 = arith.constant 0 : i32
    %c0_i32_0 = arith.constant 0 : i32
    return %arg0, %c0_i32 : i32, i32
  }
  func.func @transform_1(%arg0: i32) -> (i32, i32) {
    %c0_i32 = arith.constant 0 : i32
    %c0_i32_0 = arith.constant 0 : i32
    %c0_i32_1 = arith.constant 0 : i32
    return %c0_i32, %c0_i32_0 : i32, i32
  }
  func.func @transform_2(%arg0: i32) -> (i32, i32) {
    %c0_i32 = arith.constant 0 : i32
    %c0_i32_0 = arith.constant 0 : i32
    %c0_i32_1 = arith.constant 0 : i32
    return %c0_i32, %c0_i32_0 : i32, i32
  }
  func.func @transform_3(%arg0: i32) -> (i32, i32) {
    %c0_i32 = arith.constant 0 : i32
    %c0_i32_0 = arith.constant 0 : i32
    %c0_i32_1 = arith.constant 0 : i32
    return %c0_i32, %c0_i32_0 : i32, i32
  }
  func.func @transform_4(%arg0: i32) -> (i32, i32) {
    %c0_i32 = arith.constant 0 : i32
    %c0_i32_0 = arith.constant 0 : i32
    return %arg0, %c0_i32 : i32, i32
  }
}

</mosaic_0001>

<bundles_post_ra>
// kernel: tpu_custom_call.1
= control target key start
LH: loop header
LB: loop body
LE: loop exit
PB: predicated region body
PF: predicated region fallthrough
CT: control target
= control target key end

     0   :  { %9 = vsyncpa [#allocation3], 0  ;;  %s2391_s0 = inlined_call_operand.hbm [shape: f32[8,128], index: 0, kind: input, shape index: {}]   ;;  %s2392_s1 = inlined_call_operand.hbm [shape: bf16[128,512], index: 1, kind: input, shape index: {}]   ;;  %s2393_s2 = inlined_call_operand.hbm [shape: bf16[512,512], index: 2, kind: input, shape index: {}]   ;;  %s2394_s3 = inlined_call_operand.hbm [shape: f32[8,512], index: 3, kind: input, shape index: {}]   ;;  %s2395_s4 = inlined_call_operand.vmem [shape: f32[8,1], index: 4, kind: output, shape index: {}]  }
   0x1   :  { %10 = vsyncpa [#allocation5], 0 }
   0x2   :  { %11 = vsyncpa [#allocation8], 0 }
   0x3   :  { %16 = vsyncadd [#allocation3], 128  ;;  %s2185_s15 = smov [#allocation4]  }
   0x4   :  { %s29_s16 = sshll.u32 %s2185_s15, 4  ;;  %s30_s16 = int_to_ptr.vmem [resolvable:$true] %s29_s16 }
   0x5   :  { %s2107_s17 = scalar_lea.vmem %s30_s16, 4096  ;;  %p2112_p1 = scmp.lt.s32.totalorder %s30_s16, %s30_s16 }
   0x6   :  { %p2108_p0 = scmp.ne.s32.totalorder %s30_s16, %s2107_s17  ;;  %p2113_p2 = scmp.lt.s32.totalorder %s2107_s17, %s2107_s17 }
   0x8   :  { %p2114_p3 = por %p2113_p2, %p2112_p1 }
   0xa   :  { %p2115_p4 = pnand %p2114_p3, %p2108_p0 }
   0xc   :  { %2118 = shalt.err (!%p2115_p4)
}
   0xd   :  { %s2186_s18 = smov 256   ;;  %s2187_s19 = smov 16  }
   0xe   :  { %35 = dma.hbm_to_vmem [thread:$0]  %s2392_s1, 4096, %s30_s16, [#allocation5], %s2186_s18, %s2186_s18, %s2187_s19  }
   0xf   :  { %s2188_s22 = smov [#allocation2]  }
  0x10   :  { %s17_s23 = sshll.u32 %s2188_s22, 4  ;;  %s18_s23 = int_to_ptr.vmem [resolvable:$true] %s17_s23 }
  0x11   :  { %s2127_s24 = scalar_lea.vmem %s18_s23, 128  ;;  %s2131_s25 = scalar_lea.vmem %s18_s23, 256 }
  0x12   :  { %p2128_p5 = scmp.ne.s32.totalorder %s18_s23, %s2127_s24  ;;  %p2132_p6 = scmp.lt.s32.totalorder %s18_s23, %s18_s23 }
  0x13   :  { %p2133_p7 = scmp.lt.s32.totalorder %s2131_s25, %s2127_s24 }
  0x15   :  { %p2134_p8 = por %p2133_p7, %p2132_p6 }
  0x17   :  { %p2135_p9 = pnand %p2134_p8, %p2128_p5 }
  0x19   :  { %2138 = shalt.err (!%p2135_p9)
}
  0x1a   :  { %s2189_s26 = smov 128   ;;  %s2190_s27 = smov 8  }
  0x1b   :  { %23 = dma.hbm_to_vmem [thread:$0]  %s2391_s0, 128, %s18_s23, [#allocation3], %s2189_s26, %s2189_s26, %s2190_s27  }
  0x1c   :  { %s2191_s30 = smov [#allocation6]   ;;  %s2192_s1 = smov [#allocation7]  }
  0x1d   :  { %s41_s5 = sshll.u32 %s2191_s30, 4  ;;  %s54_s6 = sshll.u32 %s2192_s1, 4  ;;  %s42_s5 = int_to_ptr.vmem [resolvable:$true] %s41_s5  ;;  %s55_s6 = int_to_ptr.vmem [resolvable:$true] %s54_s6 }
  0x1e   :  { %s2147_s7 = scalar_lea.vmem %s42_s5, 16384  ;;  %p2152_p11 = scmp.lt.s32.totalorder %s42_s5, %s42_s5 }
  0x1f   :  { %p2148_p10 = scmp.ne.s32.totalorder %s42_s5, %s2147_s7  ;;  %p2153_p12 = scmp.lt.s32.totalorder %s2147_s7, %s2147_s7 }
  0x21   :  { %p2154_p13 = por %p2153_p12, %p2152_p11 }
  0x23   :  { %p2155_p0 = pnand %p2154_p13, %p2148_p10 }
  0x25   :  { %2158 = shalt.err (!%p2155_p0)
}
  0x26   :  { %47 = dma.hbm_to_vmem [thread:$0]  %s2393_s2, 16384, %s42_s5, [#allocation5], %s2186_s18, %s2186_s18, %s2187_s19  }
  0x27   :  { %s2167_s0 = scalar_lea.vmem %s55_s6, 512  ;;  %p2172_p2 = scmp.lt.s32.totalorder %s55_s6, %s55_s6 }
  0x28   :  { %p2168_p1 = scmp.ne.s32.totalorder %s55_s6, %s2167_s0  ;;  %p2173_p3 = scmp.lt.s32.totalorder %s2167_s0, %s2167_s0 }
  0x2a   :  { %p2174_p4 = por %p2173_p3, %p2172_p2 }
  0x2c   :  { %p2175_p5 = pnand %p2174_p4, %p2168_p1 }
  0x2e   :  { %2178 = shalt.err (!%p2175_p5)
}
  0x2f   :  { %57 = dma.hbm_to_vmem [thread:$0]  %s2394_s3, 512, %s55_s6, [#allocation8]  }
  0x30   :  { %2179 = dma.done.wait [#allocation3], 256  }
  0x31   :  { %2180 = vsyncadd [#allocation3], 4294967040 }
  0x32   :  { %2181 = dma.done.wait [#allocation5], 20480  }
  0x33   :  { %2182 = vsyncadd [#allocation5], 4294946816 }
  0x34   :  { %2183 = dma.done.wait [#allocation8], 512  }
  0x35   :  { %2184 = vsyncadd [#allocation8], 4294966784  ;;  %v2193_v0 = vmov 0   ;;  %v1843_v1 = vld [vmem:[#allocation4 + $0xe4] ss:$16 sps:$4 sm:$0xff]   ;;  %v72_v34 = vld [vmem:[#allocation2 + $0x8] sm:$0xff] }
  0x36   :  { %318 = vmatprep.mubr.bf16.mxu0 %v2193_v0  ;;  %361 = vmatprep.mubr.bf16.mxu1 %v2193_v0  ;;  %v1845_v2 = vld [vmem:[#allocation4 + $0xec] ss:$16 sps:$4 sm:$0xff]   ;;  %v1847_v3 = vld [vmem:[#allocation4 + $0xe0] ss:$16 sps:$4 sm:$0xff]   ;;  %v1848_v4 = vld [vmem:[#allocation4 + $0xe8] ss:$16 sps:$4 sm:$0xff]   ;;  %v110_v0 = vlaneseq }
  0x37   :  { %286 = vmatprep.subr.bf16.mxu0 %v1843_v1  ;;  %329 = vmatprep.subr.bf16.mxu1 %v1845_v2  ;;  %v1849_v5 = vld [vmem:[#allocation4 + $0xc4] ss:$16 sps:$4 sm:$0xff]   ;;  %v1851_v6 = vld [vmem:[#allocation4 + $0xcc] ss:$16 sps:$4 sm:$0xff]   ;;  %v1853_v7 = vld [vmem:[#allocation4 + $0xc0] ss:$16 sps:$4 sm:$0xff]  }
  0x38   :  { %287 = vmatpush1.bf16.msra.mxu0 %v1847_v3  ;;  %330 = vmatpush1.bf16.msra.mxu1 %v1848_v4  ;;  %v1854_v8 = vld [vmem:[#allocation4 + $0xc8] ss:$16 sps:$4 sm:$0xff]   ;;  %v1855_v9 = vld [vmem:[#allocation4 + $0xa4] ss:$16 sps:$4 sm:$0xff]   ;;  %v1857_v10 = vld [vmem:[#allocation4 + $0xac] ss:$16 sps:$4 sm:$0xff]  }
  0x39   :  { %288 = vmatprep.subr.bf16.mxu0 %v1849_v5  ;;  %331 = vmatprep.subr.bf16.mxu1 %v1851_v6  ;;  %v1859_v11 = vld [vmem:[#allocation4 + $0xa0] ss:$16 sps:$4 sm:$0xff]   ;;  %v1860_v12 = vld [vmem:[#allocation4 + $0xa8] ss:$16 sps:$4 sm:$0xff]   ;;  %v1861_v13 = vld [vmem:[#allocation4 + $0x84] ss:$16 sps:$4 sm:$0xff]  }
  0x3a   :  { %v1863_v14 = vld [vmem:[#allocation4 + $0x8c] ss:$16 sps:$4 sm:$0xff]   ;;  %v1865_v15 = vld [vmem:[#allocation4 + $0x80] ss:$16 sps:$4 sm:$0xff]   ;;  %v1866_v16 = vld [vmem:[#allocation4 + $0x88] ss:$16 sps:$4 sm:$0xff]  }
  0x3b   :  { %v1867_v17 = vld [vmem:[#allocation4 + $0x64] ss:$16 sps:$4 sm:$0xff]   ;;  %v1869_v18 = vld [vmem:[#allocation4 + $0x6c] ss:$16 sps:$4 sm:$0xff]   ;;  %v1871_v19 = vld [vmem:[#allocation4 + $0x60] ss:$16 sps:$4 sm:$0xff]  }
  0x3c   :  { %289 = vmatpush1.bf16.msra.mxu0 %v1853_v7  ;;  %332 = vmatpush1.bf16.msra.mxu1 %v1854_v8  ;;  %v1872_v20 = vld [vmem:[#allocation4 + $0x68] ss:$16 sps:$4 sm:$0xff]   ;;  %v1873_v21 = vld [vmem:[#allocation4 + $0x44] ss:$16 sps:$4 sm:$0xff]   ;;  %v1875_v22 = vld [vmem:[#allocation4 + $0x4c] ss:$16 sps:$4 sm:$0xff]  }
  0x3d   :  { %290 = vmatprep.subr.bf16.mxu0 %v1855_v9  ;;  %333 = vmatprep.subr.bf16.mxu1 %v1857_v10  ;;  %v1877_v23 = vld [vmem:[#allocation4 + $0x40] ss:$16 sps:$4 sm:$0xff]   ;;  %v1878_v24 = vld [vmem:[#allocation4 + $0x48] ss:$16 sps:$4 sm:$0xff]   ;;  %v1879_v25 = vld [vmem:[#allocation4 + $0x24] ss:$16 sps:$4 sm:$0xff]  }
  0x3e   :  { %v1881_v26 = vld [vmem:[#allocation4 + $0x2c] ss:$16 sps:$4 sm:$0xff]   ;;  %v1883_v27 = vld [vmem:[#allocation4 + $0x20] ss:$16 sps:$4 sm:$0xff]   ;;  %v1884_v28 = vld [vmem:[#allocation4 + $0x28] ss:$16 sps:$4 sm:$0xff]  }
  0x3f   :  { %v1885_v29 = vld [vmem:[#allocation4 + $0x4] ss:$16 sps:$4 sm:$0xff]   ;;  %v1887_v30 = vld [vmem:[#allocation4 + $0xc] ss:$16 sps:$4 sm:$0xff]   ;;  %v1889_v31 = vld [vmem:[#allocation4] ss:$16 sps:$4 sm:$0xff]  }
  0x40   :  { %291 = vmatpush1.bf16.msra.mxu0 %v1859_v11  ;;  %334 = vmatpush1.bf16.msra.mxu1 %v1860_v12  ;;  %v1890_v32 = vld [vmem:[#allocation4 + $0x8] ss:$16 sps:$4 sm:$0xff]   ;;  %v71_v33 = vld [vmem:[#allocation2] sm:$0xff]  ;;  %v2237_v1 = vshrl.u32 %v110_v0, 7  ;;  %v2240_v3 = vld [vmem:[#allocation7] sm:$0xff]  ;;  %vm1625_vm0 = vcmask 7168  }
  0x41   :  { %292 = vmatprep.subr.bf16.mxu0 %v1861_v13  ;;  %335 = vmatprep.subr.bf16.mxu1 %v1863_v14  ;;  %v73_v35 = vpack.c.bf16 %v72_v34, %v71_v33  ;;  %v1891_v36 = vld [vmem:[#allocation6 + $0xe0] ss:$16 sps:$4 sm:$0xff]   ;;  %v1893_v37 = vld [vmem:[#allocation6 + $0xe4] ss:$16 sps:$4 sm:$0xff]   ;;  %v2244_v5 = vld [vmem:[#allocation7 + $0x8] sm:$0xff] }
  0x42   :  { %v1894_v38 = vld [vmem:[#allocation6 + $0x2e0] ss:$16 sps:$4 sm:$0xff]   ;;  %v1896_v39 = vld [vmem:[#allocation6 + $0x2e4] ss:$16 sps:$4 sm:$0xff]   ;;  %v112_v2 = vsub.s32 0, %v2237_v1  ;;  %v2249_v9 = vld [vmem:[#allocation7 + $0x18] sm:$0xff] }
  0x43   :  { %v1899_v40 = vld [vmem:[#allocation6 + $0xc4] ss:$16 sps:$4 sm:$0xff]   ;;  %v1897_v42 = vld [vmem:[#allocation6 + $0xc0] ss:$16 sps:$4 sm:$0xff]  }
  0x44   :  { %293 = vmatpush1.bf16.msra.mxu0 %v1865_v15  ;;  %336 = vmatpush1.bf16.msra.mxu1 %v1866_v16  ;;  %v1902_v41 = vld [vmem:[#allocation6 + $0x2c4] ss:$16 sps:$4 sm:$0xff]   ;;  %v1900_v43 = vld [vmem:[#allocation6 + $0x2c0] ss:$16 sps:$4 sm:$0xff]   ;;  %v113_v6 = vrot.slane %v2240_v3, %v112_v2  ;;  %v117_v8 = vrot.slane %v2244_v5, %v112_v2  ;;  %v125_v15 = vrot.slane %v2249_v9, %v112_v2 }
  0x45   :  { %294 = vmatprep.subr.bf16.mxu0 %v1867_v17  ;;  %337 = vmatprep.subr.bf16.mxu1 %v1869_v18  ;;  %v1905_v44 = vld [vmem:[#allocation6 + $0xa4] ss:$16 sps:$4 sm:$0xff]   ;;  %v1903_v46 = vld [vmem:[#allocation6 + $0xa0] ss:$16 sps:$4 sm:$0xff]  }
  0x46   :  { %v1908_v45 = vld [vmem:[#allocation6 + $0x2a4] ss:$16 sps:$4 sm:$0xff]   ;;  %v1906_v47 = vld [vmem:[#allocation6 + $0x2a0] ss:$16 sps:$4 sm:$0xff]  }
  0x47   :  { %v1911_v48 = vld [vmem:[#allocation6 + $0x84] ss:$16 sps:$4 sm:$0xff]   ;;  %v1909_v50 = vld [vmem:[#allocation6 + $0x80] ss:$16 sps:$4 sm:$0xff]  }
  0x48   :  { %295 = vmatpush1.bf16.msra.mxu0 %v1871_v19  ;;  %338 = vmatpush1.bf16.msra.mxu1 %v1872_v20  ;;  %v1914_v49 = vld [vmem:[#allocation6 + $0x284] ss:$16 sps:$4 sm:$0xff]   ;;  %v1912_v51 = vld [vmem:[#allocation6 + $0x280] ss:$16 sps:$4 sm:$0xff]  }
  0x49   :  { %296 = vmatprep.subr.bf16.mxu0 %v1873_v21  ;;  %339 = vmatprep.subr.bf16.mxu1 %v1875_v22  ;;  %v1917_v52 = vld [vmem:[#allocation6 + $0x64] ss:$16 sps:$4 sm:$0xff]   ;;  %v1915_v54 = vld [vmem:[#allocation6 + $0x60] ss:$16 sps:$4 sm:$0xff]  }
  0x4a   :  { %v1920_v53 = vld [vmem:[#allocation6 + $0x264] ss:$16 sps:$4 sm:$0xff]   ;;  %v1918_v55 = vld [vmem:[#allocation6 + $0x260] ss:$16 sps:$4 sm:$0xff]  }
  0x4b   :  { %v1923_v56 = vld [vmem:[#allocation6 + $0x44] ss:$16 sps:$4 sm:$0xff]   ;;  %v1921_v58 = vld [vmem:[#allocation6 + $0x40] ss:$16 sps:$4 sm:$0xff]  }
  0x4c   :  { %297 = vmatpush1.bf16.msra.mxu0 %v1877_v23  ;;  %340 = vmatpush1.bf16.msra.mxu1 %v1878_v24  ;;  %v1926_v57 = vld [vmem:[#allocation6 + $0x244] ss:$16 sps:$4 sm:$0xff]   ;;  %v1924_v59 = vld [vmem:[#allocation6 + $0x240] ss:$16 sps:$4 sm:$0xff]  }
  0x4d   :  { %298 = vmatprep.subr.bf16.mxu0 %v1879_v25  ;;  %341 = vmatprep.subr.bf16.mxu1 %v1881_v26  ;;  %v1929_v60 = vld [vmem:[#allocation6 + $0x24] ss:$16 sps:$4 sm:$0xff]   ;;  %v1927_v62 = vld [vmem:[#allocation6 + $0x20] ss:$16 sps:$4 sm:$0xff]  }
  0x4e   :  { %v1932_v61 = vld [vmem:[#allocation6 + $0x224] ss:$16 sps:$4 sm:$0xff]   ;;  %v1930_v63 = vld [vmem:[#allocation6 + $0x220] ss:$16 sps:$4 sm:$0xff]  }
  0x4f   :  { %v2242_v4 = vld [vmem:[#allocation7 + $0x10] sm:$0xff] }
  0x50   :  { %299 = vmatpush1.bf16.msra.mxu0 %v1883_v27  ;;  %342 = vmatpush1.bf16.msra.mxu1 %v1884_v28  ;;  %v121_v7 = vrot.slane %v2242_v4, %v112_v2  ;;  %v1962_v0 = vld [vmem:[#allocation6 + $0x384] ss:$16 sps:$4 sm:$0xff]   ;;  %v1957_v2 = vld [vmem:[#allocation6 + $0x180] ss:$16 sps:$4 sm:$0xff]  }
  0x51   :  { %300 = vmatprep.subr.bf16.mxu0 %v1885_v29  ;;  %343 = vmatprep.subr.bf16.mxu1 %v1887_v30 }
  0x54   :  { %301 = vmatpush1.bf16.msra.mxu0 %v1889_v31  ;;  %344 = vmatpush1.bf16.msra.mxu1 %v1890_v32 }
  0x55   :  { %1281 = vmatprep.subr.bf16.mxu0 %v1893_v37  ;;  %1324 = vmatprep.subr.bf16.mxu1 %v1896_v39 }
  0x57   :  { %319 = vmatmul.mubr.bf16.vlgmr.msra.gmra.mxu0 %v73_v35  ;;  %362 = vmatmul.mubr.bf16.vlgmr.msra.gmra.mxu1 %v73_v35 }
  0x58   :  { %1282 = vmatpush1.bf16.msra.mxu0 %v1891_v36  ;;  %1325 = vmatpush1.bf16.msra.mxu1 %v1894_v38 }
  0x59   :  { %1283 = vmatprep.subr.bf16.mxu0 %v1899_v40  ;;  %1326 = vmatprep.subr.bf16.mxu1 %v1902_v41 }
  0x5c   :  { %1284 = vmatpush1.bf16.msra.mxu0 %v1897_v42  ;;  %1327 = vmatpush1.bf16.msra.mxu1 %v1900_v43 }
  0x5d   :  { %1285 = vmatprep.subr.bf16.mxu0 %v1905_v44  ;;  %1328 = vmatprep.subr.bf16.mxu1 %v1908_v45 }
  0x60   :  { %1286 = vmatpush1.bf16.msra.mxu0 %v1903_v46  ;;  %1329 = vmatpush1.bf16.msra.mxu1 %v1906_v47  ;;  %v1935_v47 = vld [vmem:[#allocation6 + $0x4] ss:$16 sps:$4 sm:$0xff]  }
  0x61   :  { %1287 = vmatprep.subr.bf16.mxu0 %v1911_v48  ;;  %1330 = vmatprep.subr.bf16.mxu1 %v1914_v49  ;;  %v1938_v48 = vld [vmem:[#allocation6 + $0x204] ss:$16 sps:$4 sm:$0xff]   ;;  %v1933_v49 = vld [vmem:[#allocation6] ss:$16 sps:$4 sm:$0xff]  }
  0x64   :  { %1288 = vmatpush1.bf16.msra.mxu0 %v1909_v50  ;;  %1331 = vmatpush1.bf16.msra.mxu1 %v1912_v51  ;;  %v1936_v50 = vld [vmem:[#allocation6 + $0x200] ss:$16 sps:$4 sm:$0xff]   ;;  %v1941_v51 = vld [vmem:[#allocation6 + $0x1e4] ss:$16 sps:$4 sm:$0xff]  }
  0x65   :  { %1289 = vmatprep.subr.bf16.mxu0 %v1917_v52  ;;  %1332 = vmatprep.subr.bf16.mxu1 %v1920_v53  ;;  %v1944_v52 = vld [vmem:[#allocation6 + $0x3e4] ss:$16 sps:$4 sm:$0xff]   ;;  %v1939_v53 = vld [vmem:[#allocation6 + $0x1e0] ss:$16 sps:$4 sm:$0xff]  }
  0x68   :  { %1290 = vmatpush1.bf16.msra.mxu0 %v1915_v54  ;;  %1333 = vmatpush1.bf16.msra.mxu1 %v1918_v55  ;;  %v1942_v54 = vld [vmem:[#allocation6 + $0x3e0] ss:$16 sps:$4 sm:$0xff]   ;;  %v1947_v55 = vld [vmem:[#allocation6 + $0x1c4] ss:$16 sps:$4 sm:$0xff]  }
  0x69   :  { %1291 = vmatprep.subr.bf16.mxu0 %v1923_v56  ;;  %1334 = vmatprep.subr.bf16.mxu1 %v1926_v57  ;;  %v1950_v56 = vld [vmem:[#allocation6 + $0x3c4] ss:$16 sps:$4 sm:$0xff]   ;;  %v1945_v57 = vld [vmem:[#allocation6 + $0x1c0] ss:$16 sps:$4 sm:$0xff]  }
  0x6c   :  { %1292 = vmatpush1.bf16.msra.mxu0 %v1921_v58  ;;  %1335 = vmatpush1.bf16.msra.mxu1 %v1924_v59  ;;  %v1948_v58 = vld [vmem:[#allocation6 + $0x3c0] ss:$16 sps:$4 sm:$0xff]  }
  0x6d   :  { %1293 = vmatprep.subr.bf16.mxu0 %v1929_v60  ;;  %1336 = vmatprep.subr.bf16.mxu1 %v1932_v61  ;;  %v1951_v59 = vld [vmem:[#allocation6 + $0x1a0] ss:$16 sps:$4 sm:$0xff]   ;;  %v1953_v60 = vld [vmem:[#allocation6 + $0x1a4] ss:$16 sps:$4 sm:$0xff]  }
  0x6e   :  { %v1954_v61 = vld [vmem:[#allocation6 + $0x3a0] ss:$16 sps:$4 sm:$0xff]  }
  0x70   :  { %1294 = vmatpush1.bf16.msra.mxu0 %v1927_v62  ;;  %1337 = vmatpush1.bf16.msra.mxu1 %v1930_v63  ;;  %v1956_v62 = vld [vmem:[#allocation6 + $0x3a4] ss:$16 sps:$4 sm:$0xff]  }
  0x71   :  { %1295 = vmatprep.subr.bf16.mxu0 %v1935_v47  ;;  %1338 = vmatprep.subr.bf16.mxu1 %v1938_v48  ;;  %v1959_v63 = vld [vmem:[#allocation6 + $0x184] ss:$16 sps:$4 sm:$0xff]   ;;  %v415_v48 = vsub.s32 1, %v2237_v1 }
  0x74   :  { %1296 = vmatpush1.bf16.msra.mxu0 %v1933_v49  ;;  %1339 = vmatpush1.bf16.msra.mxu1 %v1936_v50  ;;  %v455_v49 = vsub.s32 2, %v2237_v1  ;;  %v420_v50 = vrot.slane %v2244_v5, %v415_v48 }
  0x75   :  { %1297 = vmatprep.subr.bf16.mxu0 %v1941_v51  ;;  %1340 = vmatprep.subr.bf16.mxu1 %v1944_v52  ;;  %v428_v51 = vrot.slane %v2249_v9, %v415_v48  ;;  %v416_v52 = vrot.slane %v2240_v3, %v415_v48 }
  0x78   :  { %1298 = vmatpush2.bf16.msra.mxu0 %v1939_v53  ;;  %1341 = vmatpush2.bf16.msra.mxu1 %v1942_v54  ;;  %v424_v53 = vrot.slane %v2242_v4, %v415_v48 }
  0x79   :  { %1299 = vmatprep.subr.bf16.mxu0 %v1947_v55  ;;  %1342 = vmatprep.subr.bf16.mxu1 %v1950_v56  ;;  %v460_v55 = vrot.slane %v2244_v5, %v455_v49  ;;  %v468_v56 = vrot.slane %v2249_v9, %v455_v49 }
  0x7c   :  { %1300 = vmatpush2.bf16.msra.mxu0 %v1945_v57  ;;  %1343 = vmatpush2.bf16.msra.mxu1 %v1948_v58 }
  0x7d   :  { %1301 = vmatprep.subr.bf16.mxu0 %v1953_v60  ;;  %1344 = vmatprep.subr.bf16.mxu1 %v1956_v62 }
  0x80   :  { %1302 = vmatpush2.bf16.msra.mxu0 %v1951_v59  ;;  %1345 = vmatpush2.bf16.msra.mxu1 %v1954_v61  ;;  %v456_v61 = vrot.slane %v2240_v3, %v455_v49 }
  0x81   :  { %1303 = vmatprep.subr.bf16.mxu0 %v1959_v63  ;;  %1346 = vmatprep.subr.bf16.mxu1 %v1962_v0  ;;  %v464_v0 = vrot.slane %v2242_v4, %v455_v49 }
  0x84   :  { %1304 = vmatpush2.bf16.msra.mxu0 %v1957_v2 }
 0x117   :  { %v320_v10 = vpop.f32.mrf.mxu0  ;;  %v363_v11 = vpop.f32.mrf.mxu1 }
 0x118   :  { %v2251_v12 = vadd.f32 %v320_v10, %v113_v6  ;;  %v2253_v13 = vadd.f32 %v363_v11, %v121_v7  ;;  %v1963_v10 = vld [vmem:[#allocation6 + $0x160] ss:$16 sps:$4 sm:$0xff]  }
 0x119   :  { %v322_v14 = vpop.f32.mrf.mxu0  ;;  %v365_v16 = vpop.f32.mrf.mxu1  ;;  %v1966_v11 = vld [vmem:[#allocation6 + $0x360] ss:$16 sps:$4 sm:$0xff]  }
 0x11a   :  { %v2256_v17 = vadd.f32 %v322_v14, %v117_v8  ;;  %v385_v23 = vmul.f32 %v2251_v12, %v2251_v12  ;;  %v2266_v24 = vadd.f32 %v365_v16, %v125_v15  ;;  %v387_v27 = vmul.f32 %v2253_v13, %v2253_v13  ;;  %v1971_v14 = vld [vmem:[#allocation6 + $0x144] ss:$16 sps:$4 sm:$0xff]   ;;  %v1969_v16 = vld [vmem:[#allocation6 + $0x140] ss:$16 sps:$4 sm:$0xff]  }
 0x11b   :  { %v324_v18 = vpop.f32.mrf.mxu0  ;;  %v367_v19 = vpop.f32.mrf.mxu1 }
 0x11c   :  { %v386_v20 = vmul.f32 %v2256_v17, %v2256_v17  ;;  %v2260_v21 = vadd.f32 %v324_v18, %v113_v6  ;;  %v372_v22 = vadd.f32 %v2256_v17, %v2251_v12  ;;  %v2270_v28 = vadd.f32 %v367_v19, %v121_v7  ;;  %v1960_v6 = vld [vmem:[#allocation6 + $0x380] ss:$16 sps:$4 sm:$0xff]   ;;  %v1965_v7 = vld [vmem:[#allocation6 + $0x164] ss:$16 sps:$4 sm:$0xff]  }
 0x11d   :  { %v326_v25 = vpop.f32.mrf.mxu0  ;;  %v369_v26 = vpop.f32.mrf.mxu1  ;;  %v388_v37 = vmul.f32 %v2266_v24, %v2266_v24  ;;  %1347 = vmatpush2.bf16.msra.mxu1 %v1960_v6  ;;  %1305 = vmatprep.subr.bf16.mxu0 %v1965_v7  ;;  %v1972_v18 = vld [vmem:[#allocation6 + $0x340] ss:$16 sps:$4 sm:$0xff]   ;;  %v1977_v19 = vld [vmem:[#allocation6 + $0x124] ss:$16 sps:$4 sm:$0xff]  }
 0x11e   :  { %v2272_v29 = vadd.f32 %v326_v25, %v117_v8  ;;  %v373_v30 = vadd.f32 %v372_v22, %v2253_v13  ;;  %v393_v31 = vadd.f32 %v386_v20, %v385_v23  ;;  %v389_v32 = vmul.f32 %v2260_v21, %v2260_v21  ;;  %v1968_v8 = vld [vmem:[#allocation6 + $0x364] ss:$16 sps:$4 sm:$0xff]   ;;  %1306 = vmatpush2.bf16.msra.mxu0 %v1963_v10  ;;  %v1975_v22 = vld [vmem:[#allocation6 + $0x120] ss:$16 sps:$4 sm:$0xff]  }
 0x11f   :  { %v2281_v35 = vadd.f32 %v369_v26, %v125_v15  ;;  %v391_v39 = vmul.f32 %v2270_v28, %v2270_v28  ;;  %1348 = vmatprep.subr.bf16.mxu1 %v1968_v8  ;;  %v1974_v15 = vld [vmem:[#allocation6 + $0x344] ss:$16 sps:$4 sm:$0xff]   ;;  %1307 = vmatprep.subr.bf16.mxu0 %v1971_v14  ;;  %v1978_v23 = vld [vmem:[#allocation6 + $0x320] ss:$16 sps:$4 sm:$0xff]  }
 0x120   :  { %v377_v33 = vadd.f32 %v2272_v29, %v2260_v21  ;;  %v390_v34 = vmul.f32 %v2272_v29, %v2272_v29  ;;  %v374_v36 = vadd.f32 %v373_v30, %v2266_v24  ;;  %v394_v38 = vadd.f32 %v393_v31, %v387_v27  ;;  %v1980_v20 = vld [vmem:[#allocation6 + $0x324] ss:$16 sps:$4 sm:$0xff]   ;;  %v1981_v27 = vld [vmem:[#allocation6 + $0x100] ss:$16 sps:$4 sm:$0xff]   ;;  %v1989_v31 = vld [vmem:[#allocation6 + $0xec] ss:$16 sps:$4 sm:$0xff]  }
 0x121   :  { %v392_v44 = vmul.f32 %v2281_v35, %v2281_v35  ;;  %1349 = vmatpush2.bf16.msra.mxu1 %v1966_v11  ;;  %v1983_v25 = vld [vmem:[#allocation6 + $0x104] ss:$16 sps:$4 sm:$0xff]   ;;  %v1984_v30 = vld [vmem:[#allocation6 + $0x300] ss:$16 sps:$4 sm:$0xff]  }
 0x122   :  { %v378_v40 = vadd.f32 %v377_v33, %v2270_v28  ;;  %v398_v41 = vadd.f32 %v390_v34, %v389_v32  ;;  %375 = vadd.xlane.f32.xlu0 %v374_v36  ;;  %v395_v42 = vadd.f32 %v394_v38, %v388_v37  ;;  %1350 = vmatprep.subr.bf16.mxu1 %v1974_v15  ;;  %v1986_v26 = vld [vmem:[#allocation6 + $0x304] ss:$16 sps:$4 sm:$0xff]   ;;  %v1992_v32 = vld [vmem:[#allocation6 + $0x2ec] ss:$16 sps:$4 sm:$0xff]  }
 0x123   :  { %1308 = vmatpush2.bf16.msra.mxu0 %v1969_v16 }
 0x124   :  { %v379_v43 = vadd.f32 %v378_v40, %v2281_v35  ;;  %v399_v45 = vadd.f32 %v398_v41, %v391_v39  ;;  %396 = vadd.xlane.f32.xlu1 %v395_v42  ;;  %1309 = vmatprep.subr.bf16.mxu0 %v1977_v19 }
 0x125   :  { %1351 = vmatpush2.bf16.msra.mxu1 %v1972_v18 }
 0x126   :  { %v400_v46 = vadd.f32 %v399_v45, %v392_v44  ;;  %380 = vadd.xlane.f32.xlu0 %v379_v43  ;;  %1352 = vmatprep.subr.bf16.mxu1 %v1980_v20 }
 0x127   :  { %1310 = vmatpush2.bf16.msra.mxu0 %v1975_v22 }
 0x128   :  { %401 = vadd.xlane.f32.xlu1 %v400_v46  ;;  %1311 = vmatprep.subr.bf16.mxu0 %v1983_v25 }
 0x129   :  { %1353 = vmatpush2.bf16.msra.mxu1 %v1978_v23 }
 0x12a   :  { %1354 = vmatprep.subr.bf16.mxu1 %v1986_v26 }
 0x12b   :  { %1312 = vmatpush2.bf16.msra.mxu0 %v1981_v27 }
 0x12c   :  { %1367 = vmatprep.subr.bf16.mxu0 %v1989_v31 }
 0x12d   :  { %1355 = vmatpush2.bf16.msra.mxu1 %v1984_v30 }
 0x12e   :  { %1410 = vmatprep.subr.bf16.mxu1 %v1992_v32 }
 0x1ab   :  { %v376_v33 = vpop.xlane.xlu0 %375 }
 0x1ac   :  { %v383_v34 = vmul.f32 0.001953125, %v376_v33 }
 0x1ad   :  { %v397_v36 = vpop.xlane.xlu1 %396 }
 0x1ae   :  { %v403_v37 = vmul.f32 0.001953125, %v397_v36  ;;  %v405_v38 = vmul.f32 %v383_v34, %v383_v34 }
 0x1af   :  { %v381_v39 = vpop.xlane.xlu0 %380 }
 0x1b0   :  { %v407_v40 = vsub.f32 %v403_v37, %v405_v38  ;;  %v384_v41 = vmul.f32 0.001953125, %v381_v39 }
 0x1b1   :  { %v402_v42 = vpop.xlane.xlu1 %401 }
 0x1b2   :  { %v409_v43 = vadd.f32 1e-05, %v407_v40  ;;  %v404_v44 = vmul.f32 0.001953125, %v402_v42  ;;  %v406_v45 = vmul.f32 %v384_v41, %v384_v41 }
 0x1b4   :  { %2083 = vrsqrt.f32 %v409_v43  ;;  %v408_v46 = vsub.f32 %v404_v44, %v406_v45 }
 0x1b6   :  { %v410_v47 = vadd.f32 1e-05, %v408_v46 }
 0x1b8   :  { %2085 = vrsqrt.f32 %v410_v47 }
 0x1c1   :  { %v2084_v54 = vpop.eup %2083 }
 0x1c2   :  { %v430_v57 = vmul.f32 %v2084_v54, %v420_v50  ;;  %v432_v58 = vmul.f32 %v2084_v54, %v428_v51  ;;  %v429_v59 = vmul.f32 %v2084_v54, %v416_v52  ;;  %v431_v60 = vmul.f32 %v2084_v54, %v424_v53  ;;  %v1995_v54 = vld [vmem:[#allocation6 + $0xcc] ss:$16 sps:$4 sm:$0xff]  }
 0x1c4   :  { %v446_v62 = vmul.f32 %v430_v57, %v383_v34  ;;  %v448_v63 = vmul.f32 %v432_v58, %v383_v34  ;;  %v438_v6 = vmul.f32 %v430_v57, %v2256_v17  ;;  %v445_v7 = vmul.f32 %v429_v59, %v383_v34  ;;  %v1993_v57 = vld [vmem:[#allocation6 + $0xc8] ss:$16 sps:$4 sm:$0xff]  }
 0x1c5   :  { %v2086_v2 = vpop.eup %2085  ;;  %v447_v8 = vmul.f32 %v431_v60, %v383_v34  ;;  %v440_v16 = vmul.f32 %v432_v58, %v2266_v24  ;;  %v437_v23 = vmul.f32 %v429_v59, %v2251_v12  ;;  %v439_v25 = vmul.f32 %v431_v60, %v2253_v13  ;;  %v2001_v58 = vld [vmem:[#allocation6 + $0xac] ss:$16 sps:$4 sm:$0xff]   ;;  %v1996_v59 = vld [vmem:[#allocation6 + $0x2c8] ss:$16 sps:$4 sm:$0xff]  }
 0x1c6   :  { %v434_v10 = vmul.f32 %v2086_v2, %v420_v50  ;;  %v470_v11 = vsub.f32 %v460_v55, %v446_v62  ;;  %v436_v14 = vmul.f32 %v2086_v2, %v428_v51  ;;  %v472_v15 = vsub.f32 %v468_v56, %v448_v63  ;;  %v2004_v60 = vld [vmem:[#allocation6 + $0x2ac] ss:$16 sps:$4 sm:$0xff]   ;;  %v2002_v63 = vld [vmem:[#allocation6 + $0x2a8] ss:$16 sps:$4 sm:$0xff]  }
 0x1c7   :  { %v433_v18 = vmul.f32 %v2086_v2, %v416_v52  ;;  %v469_v19 = vsub.f32 %v456_v61, %v445_v7  ;;  %v435_v20 = vmul.f32 %v2086_v2, %v424_v53  ;;  %v471_v26 = vsub.f32 %v464_v0, %v447_v8  ;;  %v2007_v62 = vld [vmem:[#allocation6 + $0x8c] ss:$16 sps:$4 sm:$0xff]   ;;  %v2005_v2 = vld [vmem:[#allocation6 + $0x88] ss:$16 sps:$4 sm:$0xff]  }
 0x1c8   :  { %v450_v22 = vmul.f32 %v434_v10, %v384_v41  ;;  %v442_v27 = vmul.f32 %v434_v10, %v2272_v29  ;;  %v478_v17 = vadd.f32 %v470_v11, %v438_v6  ;;  %v452_v30 = vmul.f32 %v436_v14, %v384_v41  ;;  %v2013_v6 = vld [vmem:[#allocation6 + $0x6c] ss:$16 sps:$4 sm:$0xff]   ;;  %v2008_v7 = vld [vmem:[#allocation6 + $0x288] ss:$16 sps:$4 sm:$0xff]  }
 0x1c9   :  { %v449_v31 = vmul.f32 %v433_v18, %v384_v41  ;;  %v444_v33 = vmul.f32 %v436_v14, %v2281_v35  ;;  %v480_v34 = vadd.f32 %v472_v15, %v440_v16  ;;  %v441_v24 = vmul.f32 %v433_v18, %v2260_v21  ;;  %v1987_v21 = vld [vmem:[#allocation6 + $0xe8] ss:$16 sps:$4 sm:$0xff]   ;;  %v2016_v8 = vld [vmem:[#allocation6 + $0x26c] ss:$16 sps:$4 sm:$0xff]  }
 0x1ca   :  { %v474_v32 = vsub.f32 %v460_v55, %v450_v22  ;;  %v476_v36 = vsub.f32 %v468_v56, %v452_v30  ;;  %v477_v38 = vadd.f32 %v469_v19, %v437_v23  ;;  %v451_v39 = vmul.f32 %v435_v20, %v384_v41  ;;  %v1998_v56 = vld [vmem:[#allocation6 + $0x2cc] ss:$16 sps:$4 sm:$0xff]   ;;  %v2011_v10 = vld [vmem:[#allocation6 + $0x68] ss:$16 sps:$4 sm:$0xff]  }
 0x1cb   :  { %v473_v37 = vsub.f32 %v456_v61, %v449_v31  ;;  %v443_v12 = vmul.f32 %v435_v20, %v2270_v28  ;;  %v479_v29 = vadd.f32 %v471_v26, %v439_v25  ;;  %v486_v44 = vmax.f32 %v478_v17, 0.0  ;;  %v1990_v28 = vld [vmem:[#allocation6 + $0x2e8] ss:$16 sps:$4 sm:$0xff]   ;;  %v2019_v11 = vld [vmem:[#allocation6 + $0x4c] ss:$16 sps:$4 sm:$0xff]  }
 0x1cc   :  { %v482_v40 = vadd.f32 %v474_v32, %v442_v27  ;;  %v484_v13 = vadd.f32 %v476_v36, %v444_v33  ;;  %v475_v43 = vsub.f32 %v464_v0, %v451_v39  ;;  %v488_v46 = vmax.f32 %v480_v34, 0.0  ;;  %v1999_v61 = vld [vmem:[#allocation6 + $0xa8] ss:$16 sps:$4 sm:$0xff]   ;;  %v2010_v0 = vld [vmem:[#allocation6 + $0x28c] ss:$16 sps:$4 sm:$0xff]  }
 0x1cd   :  { %v481_v42 = vadd.f32 %v473_v37, %v441_v24  ;;  %v485_v48 = vmax.f32 %v477_v38, 0.0  ;;  %v487_v41 = vmax.f32 %v479_v29, 0.0  ;;  %v2014_v14 = vld [vmem:[#allocation6 + $0x268] ss:$16 sps:$4 sm:$0xff]   ;;  %v2022_v15 = vld [vmem:[#allocation6 + $0x24c] ss:$16 sps:$4 sm:$0xff]  }
 0x1ce   :  { %v490_v45 = vmax.f32 %v482_v40, 0.0  ;;  %v492_v47 = vmax.f32 %v484_v13, 0.0  ;;  %v483_v49 = vadd.f32 %v475_v43, %v443_v12  ;;  %v2017_v16 = vld [vmem:[#allocation6 + $0x48] ss:$16 sps:$4 sm:$0xff]   ;;  %v2025_v18 = vld [vmem:[#allocation6 + $0x2c] ss:$16 sps:$4 sm:$0xff]  }
 0x1cf   :  { %v489_v35 = vmax.f32 %v481_v42, 0.0  ;;  %v2020_v19 = vld [vmem:[#allocation6 + $0x248] ss:$16 sps:$4 sm:$0xff]   ;;  %v2028_v20 = vld [vmem:[#allocation6 + $0x22c] ss:$16 sps:$4 sm:$0xff]  }
 0x1d0   :  { %v494_v50 = vpack.c.bf16 %v490_v45, %v486_v44  ;;  %v496_v51 = vpack.c.bf16 %v492_v47, %v488_v46  ;;  %v491_v53 = vmax.f32 %v483_v49, 0.0  ;;  %v2023_v22 = vld [vmem:[#allocation6 + $0x28] ss:$16 sps:$4 sm:$0xff]   ;;  %v2031_v23 = vld [vmem:[#allocation6 + $0xc] ss:$16 sps:$4 sm:$0xff]  }
 0x1d1   :  { %v2310_v52 = vpack.c.bf16 %v489_v35, %v485_v48  ;;  %v2026_v25 = vld [vmem:[#allocation6 + $0x228] ss:$16 sps:$4 sm:$0xff]   ;;  %v2034_v26 = vld [vmem:[#allocation6 + $0x20c] ss:$16 sps:$4 sm:$0xff]  }
 0x1d2   :  { %1313 = vmatprep.mubr.bf16.mxu0 %v494_v50  ;;  %1356 = vmatprep.mubr.bf16.mxu1 %v496_v51  ;;  %v2313_v55 = vpack.c.bf16 %v491_v53, %v487_v41  ;;  %v2029_v27 = vld [vmem:[#allocation6 + $0x8] ss:$16 sps:$4 sm:$0xff]   ;;  %v2037_v17 = vld [vmem:[#allocation6 + $0x1ec] ss:$16 sps:$4 sm:$0xff]  }
 0x1d3   :  { %1314 = vmatmul.mubr.bf16.vlgmr.msra.gmra.mxu0 %v2310_v52  ;;  %v2032_v30 = vld [vmem:[#allocation6 + $0x208] ss:$16 sps:$4 sm:$0xff]   ;;  %v2040_v31 = vld [vmem:[#allocation6 + $0x3ec] ss:$16 sps:$4 sm:$0xff]  }
 0x1d4   :  { %1368 = vmatpush1.bf16.msra.mxu0 %v1987_v21  ;;  %1399 = vmatprep.mubr.bf16.mxu0 %v494_v50  ;;  %v2035_v32 = vld [vmem:[#allocation6 + $0x1e8] ss:$16 sps:$4 sm:$0xff]   ;;  %v2043_v33 = vld [vmem:[#allocation6 + $0x1cc] ss:$16 sps:$4 sm:$0xff]  }
 0x1d5   :  { %1357 = vmatmul.mubr.bf16.vlgmr.msra.gmra.mxu1 %v2313_v55  ;;  %1369 = vmatprep.subr.bf16.mxu0 %v1995_v54  ;;  %v2038_v34 = vld [vmem:[#allocation6 + $0x3e8] ss:$16 sps:$4 sm:$0xff]   ;;  %v2046_v24 = vld [vmem:[#allocation6 + $0x3cc] ss:$16 sps:$4 sm:$0xff]  }
 0x1d6   :  { %1411 = vmatpush1.bf16.msra.mxu1 %v1990_v28  ;;  %1442 = vmatprep.mubr.bf16.mxu1 %v496_v51  ;;  %v2041_v36 = vld [vmem:[#allocation6 + $0x1c8] ss:$16 sps:$4 sm:$0xff]   ;;  %v2049_v37 = vld [vmem:[#allocation6 + $0x1ac] ss:$16 sps:$4 sm:$0xff]  }
 0x1d7   :  { %1412 = vmatprep.subr.bf16.mxu1 %v1998_v56  ;;  %v2044_v38 = vld [vmem:[#allocation6 + $0x3c8] ss:$16 sps:$4 sm:$0xff]   ;;  %v2052_v39 = vld [vmem:[#allocation6 + $0x3ac] ss:$16 sps:$4 sm:$0xff]  }
 0x1d8   :  { %1370 = vmatpush1.bf16.msra.mxu0 %v1993_v57  ;;  %v2047_v40 = vld [vmem:[#allocation6 + $0x1a8] ss:$16 sps:$4 sm:$0xff]   ;;  %v2055_v12 = vld [vmem:[#allocation6 + $0x18c] ss:$16 sps:$4 sm:$0xff]  }
 0x1d9   :  { %1371 = vmatprep.subr.bf16.mxu0 %v2001_v58  ;;  %v2050_v13 = vld [vmem:[#allocation6 + $0x3a8] ss:$16 sps:$4 sm:$0xff]   ;;  %v2058_v42 = vld [vmem:[#allocation6 + $0x38c] ss:$16 sps:$4 sm:$0xff]  }
 0x1da   :  { %1413 = vmatpush1.bf16.msra.mxu1 %v1996_v59  ;;  %v2053_v43 = vld [vmem:[#allocation6 + $0x188] ss:$16 sps:$4 sm:$0xff]   ;;  %v2061_v29 = vld [vmem:[#allocation6 + $0x16c] ss:$16 sps:$4 sm:$0xff]  }
 0x1db   :  { %1414 = vmatprep.subr.bf16.mxu1 %v2004_v60  ;;  %v2056_v44 = vld [vmem:[#allocation6 + $0x388] ss:$16 sps:$4 sm:$0xff]   ;;  %v2064_v45 = vld [vmem:[#allocation6 + $0x36c] ss:$16 sps:$4 sm:$0xff]  }
 0x1dc   :  { %1372 = vmatpush1.bf16.msra.mxu0 %v1999_v61  ;;  %v2059_v46 = vld [vmem:[#allocation6 + $0x168] ss:$16 sps:$4 sm:$0xff]   ;;  %v2067_v47 = vld [vmem:[#allocation6 + $0x14c] ss:$16 sps:$4 sm:$0xff]   ;;  %v627_v61 = vsub.s32 3, %v2237_v1 }
 0x1dd   :  { %1373 = vmatprep.subr.bf16.mxu0 %v2007_v62  ;;  %v2062_v48 = vld [vmem:[#allocation6 + $0x368] ss:$16 sps:$4 sm:$0xff]   ;;  %v2070_v35 = vld [vmem:[#allocation6 + $0x34c] ss:$16 sps:$4 sm:$0xff]  }
 0x1de   :  { %1415 = vmatpush1.bf16.msra.mxu1 %v2002_v63  ;;  %v2065_v49 = vld [vmem:[#allocation6 + $0x148] ss:$16 sps:$4 sm:$0xff]   ;;  %v2073_v50 = vld [vmem:[#allocation6 + $0x12c] ss:$16 sps:$4 sm:$0xff]   ;;  %v632_v63 = vrot.slane %v2244_v5, %v627_v61 }
 0x1df   :  { %1416 = vmatprep.subr.bf16.mxu1 %v2010_v0  ;;  %v2068_v21 = vld [vmem:[#allocation6 + $0x348] ss:$16 sps:$4 sm:$0xff]   ;;  %v2076_v51 = vld [vmem:[#allocation6 + $0x32c] ss:$16 sps:$4 sm:$0xff]  }
 0x1e0   :  { %1374 = vmatpush1.bf16.msra.mxu0 %v2005_v2  ;;  %v2071_v41 = vld [vmem:[#allocation6 + $0x128] ss:$16 sps:$4 sm:$0xff]   ;;  %v2079_v53 = vld [vmem:[#allocation6 + $0x10c] ss:$16 sps:$4 sm:$0xff]   ;;  %v628_v2 = vrot.slane %v2240_v3, %v627_v61 }
 0x1e1   :  { %1375 = vmatprep.subr.bf16.mxu0 %v2013_v6  ;;  %v2074_v54 = vld [vmem:[#allocation6 + $0x328] ss:$16 sps:$4 sm:$0xff]   ;;  %v2082_v28 = vld [vmem:[#allocation6 + $0x30c] ss:$16 sps:$4 sm:$0xff]  }
 0x1e2   :  { %1417 = vmatpush1.bf16.msra.mxu1 %v2008_v7  ;;  %v2077_v56 = vld [vmem:[#allocation6 + $0x108] ss:$16 sps:$4 sm:$0xff]  }
 0x1e3   :  { %1418 = vmatprep.subr.bf16.mxu1 %v2016_v8  ;;  %v2080_v57 = vld [vmem:[#allocation6 + $0x308] ss:$16 sps:$4 sm:$0xff]  }
 0x1e4   :  { %1376 = vmatpush1.bf16.msra.mxu0 %v2011_v10 }
 0x1e5   :  { %1377 = vmatprep.subr.bf16.mxu0 %v2019_v11 }
 0x1e6   :  { %1419 = vmatpush1.bf16.msra.mxu1 %v2014_v14 }
 0x1e7   :  { %1420 = vmatprep.subr.bf16.mxu1 %v2022_v15 }
 0x1e8   :  { %1378 = vmatpush1.bf16.msra.mxu0 %v2017_v16  ;;  %v640_v16 = vrot.slane %v2249_v9, %v627_v61 }
 0x1e9   :  { %1379 = vmatprep.subr.bf16.mxu0 %v2025_v18 }
 0x1ea   :  { %1421 = vmatpush1.bf16.msra.mxu1 %v2020_v19 }
 0x1eb   :  { %1422 = vmatprep.subr.bf16.mxu1 %v2028_v20 }
 0x1ec   :  { %1380 = vmatpush1.bf16.msra.mxu0 %v2023_v22 }
 0x1ed   :  { %1381 = vmatprep.subr.bf16.mxu0 %v2031_v23 }
 0x1ee   :  { %1423 = vmatpush1.bf16.msra.mxu1 %v2026_v25 }
 0x1ef   :  { %1424 = vmatprep.subr.bf16.mxu1 %v2034_v26 }
 0x1f0   :  { %1382 = vmatpush1.bf16.msra.mxu0 %v2029_v27 }
 0x1f1   :  { %1383 = vmatprep.subr.bf16.mxu0 %v2037_v17 }
 0x1f2   :  { %1425 = vmatpush1.bf16.msra.mxu1 %v2032_v30 }
 0x1f3   :  { %1426 = vmatprep.subr.bf16.mxu1 %v2040_v31 }
 0x1f4   :  { %1384 = vmatpush2.bf16.msra.mxu0 %v2035_v32 }
 0x1f5   :  { %1385 = vmatprep.subr.bf16.mxu0 %v2043_v33 }
 0x1f6   :  { %1427 = vmatpush2.bf16.msra.mxu1 %v2038_v34 }
 0x1f7   :  { %1428 = vmatprep.subr.bf16.mxu1 %v2046_v24 }
 0x1f8   :  { %1386 = vmatpush2.bf16.msra.mxu0 %v2041_v36 }
 0x1f9   :  { %1387 = vmatprep.subr.bf16.mxu0 %v2049_v37 }
 0x1fa   :  { %1429 = vmatpush2.bf16.msra.mxu1 %v2044_v38 }
 0x1fb   :  { %1430 = vmatprep.subr.bf16.mxu1 %v2052_v39 }
 0x1fc   :  { %1388 = vmatpush2.bf16.msra.mxu0 %v2047_v40 }
 0x1fd   :  { %1389 = vmatprep.subr.bf16.mxu0 %v2055_v12 }
 0x1fe   :  { %1431 = vmatpush2.bf16.msra.mxu1 %v2050_v13 }
 0x1ff   :  { %1432 = vmatprep.subr.bf16.mxu1 %v2058_v42 }
 0x200   :  { %1390 = vmatpush2.bf16.msra.mxu0 %v2053_v43 }
 0x201   :  { %1391 = vmatprep.subr.bf16.mxu0 %v2061_v29 }
 0x202   :  { %1433 = vmatpush2.bf16.msra.mxu1 %v2056_v44 }
 0x203   :  { %1434 = vmatprep.subr.bf16.mxu1 %v2064_v45 }
 0x204   :  { %1392 = vmatpush2.bf16.msra.mxu0 %v2059_v46 }
 0x205   :  { %1393 = vmatprep.subr.bf16.mxu0 %v2067_v47 }
 0x206   :  { %1435 = vmatpush2.bf16.msra.mxu1 %v2062_v48 }
 0x207   :  { %1436 = vmatprep.subr.bf16.mxu1 %v2070_v35 }
 0x208   :  { %1394 = vmatpush2.bf16.msra.mxu0 %v2065_v49 }
 0x209   :  { %1395 = vmatprep.subr.bf16.mxu0 %v2073_v50 }
 0x20a   :  { %1437 = vmatpush2.bf16.msra.mxu1 %v2068_v21 }
 0x20b   :  { %1438 = vmatprep.subr.bf16.mxu1 %v2076_v51 }
 0x20c   :  { %1396 = vmatpush2.bf16.msra.mxu0 %v2071_v41 }
 0x20d   :  { %1397 = vmatprep.subr.bf16.mxu0 %v2079_v53 }
 0x20e   :  { %1439 = vmatpush2.bf16.msra.mxu1 %v2074_v54 }
 0x20f   :  { %1440 = vmatprep.subr.bf16.mxu1 %v2082_v28 }
 0x210   :  { %1398 = vmatpush2.bf16.msra.mxu0 %v2077_v56 }
 0x212   :  { %1441 = vmatpush2.bf16.msra.mxu1 %v2080_v57 }
 0x213   :  { %1400 = vmatmul.mubr.bf16.vlgmr.msra.gmra.mxu0 %v2310_v52  ;;  %v636_v52 = vrot.slane %v2242_v4, %v627_v61 }
 0x215   :  { %1443 = vmatmul.mubr.bf16.vlgmr.msra.gmra.mxu1 %v2313_v55 }
 0x293   :  { %v1315_v58 = vpop.f32.mrf.mxu0 }
 0x294   :  { %v1316_v10 = vadd.f32 %v1315_v58, %v628_v2 }
 0x295   :  { %v1317_v59 = vpop.f32.mrf.mxu0  ;;  %v1358_v60 = vpop.f32.mrf.mxu1 }
 0x296   :  { %v1318_v7 = vadd.f32 %v1317_v59, %v632_v63  ;;  %v2325_v18 = vadd.f32 %v1358_v60, %v1316_v10 }
 0x297   :  { %v1319_v62 = vpop.f32.mrf.mxu0  ;;  %v1360_v0 = vpop.f32.mrf.mxu1 }
 0x298   :  { %v2322_v14 = vadd.f32 %v1360_v0, %v1318_v7  ;;  %v1320_v55 = vadd.f32 %v1319_v62, %v628_v2  ;;  %v1465_v32 = vmul.f32 %v2325_v18, %v2325_v18 }
 0x299   :  { %v1321_v6 = vpop.f32.mrf.mxu0  ;;  %v1362_v8 = vpop.f32.mrf.mxu1 }
 0x29a   :  { %v1322_v11 = vadd.f32 %v1321_v6, %v632_v63  ;;  %v1466_v23 = vmul.f32 %v2322_v14, %v2322_v14  ;;  %v2331_v25 = vadd.f32 %v1362_v8, %v1320_v55  ;;  %v1453_v17 = vadd.f32 %v2322_v14, %v2325_v18 }
 0x29b   :  { %v1364_v15 = vpop.f32.mrf.mxu1 }
 0x29c   :  { %v2327_v19 = vadd.f32 %v1364_v15, %v1322_v11  ;;  %v1469_v40 = vmul.f32 %v2331_v25, %v2331_v25  ;;  %v1473_v43 = vadd.f32 %v1466_v23, %v1465_v32  ;;  %v1495_v11 = vsub.s32 4, %v2237_v1 }
 0x29e   :  { %v1470_v33 = vmul.f32 %v2327_v19, %v2327_v19  ;;  %v1458_v12 = vadd.f32 %v2327_v19, %v2331_v25  ;;  %v1496_v55 = vrot.slane %v2240_v3, %v1495_v11  ;;  %v1500_v15 = vrot.slane %v2244_v5, %v1495_v11 }
 0x2a0   :  { %v1478_v21 = vadd.f32 %v1470_v33, %v1469_v40 }
 0x2d3   :  { %v1401_v20 = vpop.f32.mrf.mxu0 }
 0x2d4   :  { %v1402_v22 = vadd.f32 %v1401_v20, %v636_v52  ;;  %v1508_v20 = vrot.slane %v2249_v9, %v1495_v11 }
 0x2d5   :  { %v1444_v26 = vpop.f32.mrf.mxu1  ;;  %v1403_v27 = vpop.f32.mrf.mxu0 }
 0x2d6   :  { %v2335_v30 = vadd.f32 %v1444_v26, %v1402_v22  ;;  %v1404_v31 = vadd.f32 %v1403_v27, %v640_v16  ;;  %v1575_v22 = vsub.s32 6, %v2237_v1 }
 0x2d7   :  { %v1446_v34 = vpop.f32.mrf.mxu1  ;;  %v1405_v24 = vpop.f32.mrf.mxu0 }
 0x2d8   :  { %v1467_v36 = vmul.f32 %v2335_v30, %v2335_v30  ;;  %v2343_v37 = vadd.f32 %v1446_v34, %v1404_v31  ;;  %v1406_v38 = vadd.f32 %v1405_v24, %v636_v52  ;;  %v1454_v39 = vadd.f32 %v1453_v17, %v2335_v30 }
 0x2d9   :  { %v1448_v13 = vpop.f32.mrf.mxu1  ;;  %v1407_v42 = vpop.f32.mrf.mxu0  ;;  %v1535_v52 = vsub.s32 5, %v2237_v1 }
 0x2da   :  { %v2350_v29 = vadd.f32 %v1448_v13, %v1406_v38  ;;  %v1408_v44 = vadd.f32 %v1407_v42, %v640_v16  ;;  %v1455_v45 = vadd.f32 %v1454_v39, %v2343_v37  ;;  %v1468_v46 = vmul.f32 %v2343_v37, %v2343_v37 }
 0x2db   :  { %v1450_v47 = vpop.f32.mrf.mxu1  ;;  %v1474_v48 = vadd.f32 %v1473_v43, %v1467_v36  ;;  %v1504_v16 = vrot.slane %v2242_v4, %v1495_v11  ;;  %v1536_v26 = vrot.slane %v2240_v3, %v1535_v52  ;;  %v1540_v27 = vrot.slane %v2244_v5, %v1535_v52 }
 0x2dc   :  { %v1471_v35 = vmul.f32 %v2350_v29, %v2350_v29  ;;  %v2357_v49 = vadd.f32 %v1450_v47, %v1408_v44  ;;  %1456 = vadd.xlane.f32.xlu0 %v1455_v45  ;;  %v1459_v50 = vadd.f32 %v1458_v12, %v2350_v29  ;;  %v1544_v34 = vrot.slane %v2242_v4, %v1535_v52 }
 0x2dd   :  { %v1475_v51 = vadd.f32 %v1474_v48, %v1468_v46  ;;  %v1548_v24 = vrot.slane %v2249_v9, %v1535_v52  ;;  %v1576_v36 = vrot.slane %v2240_v3, %v1575_v22  ;;  %v1580_v38 = vrot.slane %v2244_v5, %v1575_v22 }
 0x2de   :  { %v1460_v41 = vadd.f32 %v1459_v50, %v2357_v49  ;;  %v1472_v53 = vmul.f32 %v2357_v49, %v2357_v49  ;;  %v1479_v54 = vadd.f32 %v1478_v21, %v1471_v35 }
 0x2df   :  { %1476 = vadd.xlane.f32.xlu1 %v1475_v51 }
 0x2e0   :  { %1461 = vadd.xlane.f32.xlu0 %v1460_v41  ;;  %v1480_v28 = vadd.f32 %v1479_v54, %v1472_v53 }
 0x2e3   :  { %1481 = vadd.xlane.f32.xlu1 %v1480_v28 }
 0x365   :  { %v1457_v56 = vpop.xlane.xlu0 %1456 }
 0x366   :  { %v1463_v57 = vmul.f32 0.001953125, %v1457_v56 }
 0x368   :  { %v1477_v58 = vpop.xlane.xlu1 %1476  ;;  %v1485_v59 = vmul.f32 %v1463_v57, %v1463_v57 }
 0x369   :  { %v1483_v60 = vmul.f32 0.001953125, %v1477_v58  ;;  %v1462_v61 = vpop.xlane.xlu0 %1461 }
 0x36a   :  { %v1464_v62 = vmul.f32 0.001953125, %v1462_v61 }
 0x36b   :  { %v1487_v63 = vsub.f32 %v1483_v60, %v1485_v59 }
 0x36c   :  { %v1482_v0 = vpop.xlane.xlu1 %1481  ;;  %v1486_v2 = vmul.f32 %v1464_v62, %v1464_v62 }
 0x36d   :  { %v1489_v6 = vadd.f32 1e-05, %v1487_v63  ;;  %v1484_v7 = vmul.f32 0.001953125, %v1482_v0 }
 0x36f   :  { %2087 = vrsqrt.f32 %v1489_v6  ;;  %v1488_v8 = vsub.f32 %v1484_v7, %v1486_v2 }
 0x371   :  { %v1490_v10 = vadd.f32 1e-05, %v1488_v8 }
 0x373   :  { %2089 = vrsqrt.f32 %v1490_v10 }
 0x37c   :  { %v2088_v23 = vpop.eup %2087 }
 0x37d   :  { %v1509_v17 = vmul.f32 %v2088_v23, %v1496_v55  ;;  %v1510_v31 = vmul.f32 %v2088_v23, %v1500_v15  ;;  %v1511_v32 = vmul.f32 %v2088_v23, %v1504_v16  ;;  %v1512_v33 = vmul.f32 %v2088_v23, %v1508_v20 }
 0x37f   :  { %v1517_v39 = vmul.f32 %v1509_v17, %v2325_v18  ;;  %v1518_v40 = vmul.f32 %v1510_v31, %v2322_v14  ;;  %v1519_v12 = vmul.f32 %v1511_v32, %v2335_v30  ;;  %v1520_v13 = vmul.f32 %v1512_v33, %v2343_v37 }
 0x380   :  { %v2090_v42 = vpop.eup %2089  ;;  %v1525_v43 = vmul.f32 %v1509_v17, %v1463_v57  ;;  %v1526_v44 = vmul.f32 %v1510_v31, %v1463_v57  ;;  %v1527_v45 = vmul.f32 %v1511_v32, %v1463_v57  ;;  %v1528_v46 = vmul.f32 %v1512_v33, %v1463_v57 }
 0x381   :  { %v1513_v47 = vmul.f32 %v2090_v42, %v1496_v55  ;;  %v1514_v48 = vmul.f32 %v2090_v42, %v1500_v15  ;;  %v1515_v35 = vmul.f32 %v2090_v42, %v1504_v16  ;;  %v1516_v50 = vmul.f32 %v2090_v42, %v1508_v20 }
 0x382   :  { %v1549_v21 = vsub.f32 %v1536_v26, %v1525_v43  ;;  %v1550_v51 = vsub.f32 %v1540_v27, %v1526_v44  ;;  %v1551_v5 = vsub.f32 %v1544_v34, %v1527_v45  ;;  %v1552_v41 = vsub.f32 %v1548_v24, %v1528_v46 }
 0x383   :  { %v1584_v18 = vrot.slane %v2242_v4, %v1575_v22  ;;  %v1521_v14 = vmul.f32 %v1513_v47, %v2331_v25  ;;  %v1522_v30 = vmul.f32 %v1514_v48, %v2327_v19  ;;  %v1523_v37 = vmul.f32 %v1515_v35, %v2350_v29 }
 0x384   :  { %v1557_v53 = vadd.f32 %v1549_v21, %v1517_v39  ;;  %v1558_v54 = vadd.f32 %v1550_v51, %v1518_v40  ;;  %v1559_v28 = vadd.f32 %v1551_v5, %v1519_v12  ;;  %v1560_v56 = vadd.f32 %v1552_v41, %v1520_v13 }
 0x385   :  { %v1529_v57 = vmul.f32 %v1513_v47, %v1464_v62  ;;  %v1530_v58 = vmul.f32 %v1514_v48, %v1464_v62  ;;  %v1531_v59 = vmul.f32 %v1515_v35, %v1464_v62  ;;  %v1532_v60 = vmul.f32 %v1516_v50, %v1464_v62 }
 0x386   :  { %v1565_v61 = vmax.f32 %v1557_v53, 0.0  ;;  %v1566_v63 = vmax.f32 %v1558_v54, 0.0  ;;  %v1567_v0 = vmax.f32 %v1559_v28, 0.0  ;;  %v1524_v2 = vmul.f32 %v1516_v50, %v2357_v49 }
 0x387   :  { %v1553_v4 = vsub.f32 %v1536_v26, %v1529_v57  ;;  %v1554_v6 = vsub.f32 %v1540_v27, %v1530_v58  ;;  %v1555_v25 = vsub.f32 %v1544_v34, %v1531_v59  ;;  %v1556_v7 = vsub.f32 %v1548_v24, %v1532_v60 }
 0x388   :  { %v1568_v19 = vmax.f32 %v1560_v56, 0.0  ;;  %v1588_v29 = vrot.slane %v2249_v9, %v1575_v22  ;;  %v1589_v8 = vmul.f32 %v1576_v36, %v1565_v61  ;;  %v1590_v10 = vmul.f32 %v1580_v38, %v1566_v63 }
 0x389   :  { %v1561_v11 = vadd.f32 %v1553_v4, %v1521_v14  ;;  %v1562_v52 = vadd.f32 %v1554_v6, %v1522_v30  ;;  %v1563_v55 = vadd.f32 %v1555_v25, %v1523_v37  ;;  %v1564_v15 = vadd.f32 %v1556_v7, %v1524_v2 }
 0x38a   :  { %v1591_v16 = vmul.f32 %v1584_v18, %v1567_v0  ;;  %v1597_v62 = vadd.f32 %v1590_v10, %v1589_v8  ;;  %v1592_v31 = vmul.f32 %v1588_v29, %v1568_v19  ;;  %v1609_v40 = vsub.s32 7, %v2237_v1 }
 0x38b   :  { %v1569_v20 = vmax.f32 %v1561_v11, 0.0  ;;  %v1570_v23 = vmax.f32 %v1562_v52, 0.0  ;;  %v1571_v17 = vmax.f32 %v1563_v55, 0.0  ;;  %v1572_v26 = vmax.f32 %v1564_v15, 0.0 }
 0x38c   :  { %v1598_v49 = vadd.f32 %v1597_v62, %v1591_v16  ;;  %v1610_v12 = vrot.slane %v2240_v3, %v1609_v40 }
 0x38d   :  { %v1593_v27 = vmul.f32 %v1576_v36, %v1569_v20  ;;  %v1594_v32 = vmul.f32 %v1580_v38, %v1570_v23  ;;  %v1595_v34 = vmul.f32 %v1584_v18, %v1571_v17  ;;  %v1596_v9 = vmul.f32 %v1588_v29, %v1572_v26 }
 0x38e   :  { %v1599_v33 = vadd.f32 %v1598_v49, %v1592_v31 }
 0x38f   :  { %v1602_v24 = vadd.f32 %v1594_v32, %v1593_v27 }
 0x390   :  { %1600 = vadd.xlane.f32.xlu0 %v1599_v33 }
 0x391   :  { %v1603_v22 = vadd.f32 %v1602_v24, %v1595_v34 }
 0x393   :  { %v1604_v39 = vadd.f32 %v1603_v22, %v1596_v9 }
 0x395   :  { %1605 = vadd.xlane.f32.xlu1 %v1604_v39 }
 0x419   :  { %v1601_v13 = vpop.xlane.xlu0 %1600 }
 0x41a   :  { %v1611_v42 = vadd.f32 %v1610_v12, %v1601_v13 }
 0x41c   :  { %v1832_v43 = vmul.f32 -1.442695, %v1611_v42 }
 0x41e   :  { %2091 = vpow2.f32 %v1832_v43  ;;  %v1606_v44 = vpop.xlane.xlu1 %1605 }
 0x41f   :  { %v1612_v45 = vadd.f32 %v1610_v12, %v1606_v44 }
 0x421   :  { %v1833_v36 = vmul.f32 -1.442695, %v1612_v45 }
 0x423   :  { %2093 = vpow2.f32 %v1833_v36 }
 0x42b   :  { %v2092_v38 = vpop.eup %2091 }
 0x42c   :  { %v1619_v46 = vadd.f32 1.0, %v2092_v38 }
 0x42e   :  { %2095 = vrcp.f32 %v1619_v46 }
 0x430   :  { %v2094_v47 = vpop.eup %2093 }
 0x431   :  { %v1620_v48 = vadd.f32 1.0, %v2094_v47 }
 0x433   :  { %2097 = vrcp.f32 %v1620_v48 }
 0x43b   :  { %v2096_v35 = vpop.eup %2095 }
 0x43c   :  { %1626 = vst.msk [vmem:[#allocation9] sm:$0xff] %vm1625_vm0, %v2096_v35 }
 0x440   :  { %v2098_v1 = vpop.eup %2097 }
 0x443   :  { %v1658_v50 = vld [vmem:[#allocation9] sm:$0xff] }
 0x444   :  { %1659 = vst [vmem:[%s2395_s4] sm:$0xff] %v1658_v50 }
 0x445   :  { %1665 = vsyncpa [#allocation3], 1 }
 0x446   :  { %1666 = vsyncpa [#allocation5], 1 }
 0x447   :  { %1667 = vsyncpa [#allocation8], 1 }

// kernel: tpu_custom_call.1
= control target key start
LH: loop header
LB: loop body
LE: loop exit
PB: predicated region body
PF: predicated region fallthrough
CT: control target
= control target key end

     0   :  { %9 = vsyncpa [#allocation3], 0  ;;  %s2391_s0 = inlined_call_operand.hbm [shape: f32[8,128], index: 0, kind: input, shape index: {}]   ;;  %s2392_s1 = inlined_call_operand.hbm [shape: bf16[128,512], index: 1, kind: input, shape index: {}]   ;;  %s2393_s2 = inlined_call_operand.hbm [shape: bf16[512,512], index: 2, kind: input, shape index: {}]   ;;  %s2394_s3 = inlined_call_operand.hbm [shape: f32[8,512], index: 3, kind: input, shape index: {}]   ;;  %s2395_s4 = inlined_call_operand.vmem [shape: f32[8,1], index: 4, kind: output, shape index: {}]  }
   0x1   :  { %10 = vsyncpa [#allocation5], 0 }
   0x2   :  { %11 = vsyncpa [#allocation8], 0 }
   0x3   :  { %16 = vsyncadd [#allocation3], 128  ;;  %s2185_s15 = smov [#allocation4]  }
   0x4   :  { %s29_s16 = sshll.u32 %s2185_s15, 4  ;;  %s30_s16 = int_to_ptr.vmem [resolvable:$true] %s29_s16 }
   0x5   :  { %s2107_s17 = scalar_lea.vmem %s30_s16, 4096  ;;  %p2112_p1 = scmp.lt.s32.totalorder %s30_s16, %s30_s16 }
   0x6   :  { %p2108_p0 = scmp.ne.s32.totalorder %s30_s16, %s2107_s17  ;;  %p2113_p2 = scmp.lt.s32.totalorder %s2107_s17, %s2107_s17 }
   0x8   :  { %p2114_p3 = por %p2113_p2, %p2112_p1 }
   0xa   :  { %p2115_p4 = pnand %p2114_p3, %p2108_p0 }
   0xc   :  { %2118 = shalt.err (!%p2115_p4)
}
   0xd   :  { %s2186_s18 = smov 256   ;;  %s2187_s19 = smov 16  }
   0xe   :  { %35 = dma.hbm_to_vmem [thread:$0]  %s2392_s1, 4096, %s30_s16, [#allocation5], %s2186_s18, %s2186_s18, %s2187_s19  }
   0xf   :  { %s2188_s22 = smov [#allocation2]  }
  0x10   :  { %s17_s23 = sshll.u32 %s2188_s22, 4  ;;  %s18_s23 = int_to_ptr.vmem [resolvable:$true] %s17_s23 }
  0x11   :  { %s2127_s24 = scalar_lea.vmem %s18_s23, 128  ;;  %s2131_s25 = scalar_lea.vmem %s18_s23, 256 }
  0x12   :  { %p2128_p5 = scmp.ne.s32.totalorder %s18_s23, %s2127_s24  ;;  %p2132_p6 = scmp.lt.s32.totalorder %s18_s23, %s18_s23 }
  0x13   :  { %p2133_p7 = scmp.lt.s32.totalorder %s2131_s25, %s2127_s24 }
  0x15   :  { %p2134_p8 = por %p2133_p7, %p2132_p6 }
  0x17   :  { %p2135_p9 = pnand %p2134_p8, %p2128_p5 }
  0x19   :  { %2138 = shalt.err (!%p2135_p9)
}
  0x1a   :  { %s2189_s26 = smov 128   ;;  %s2190_s27 = smov 8  }
  0x1b   :  { %23 = dma.hbm_to_vmem [thread:$0]  %s2391_s0, 128, %s18_s23, [#allocation3], %s2189_s26, %s2189_s26, %s2190_s27  }
  0x1c   :  { %s2191_s30 = smov [#allocation6]   ;;  %s2192_s1 = smov [#allocation7]  }
  0x1d   :  { %s41_s5 = sshll.u32 %s2191_s30, 4  ;;  %s54_s6 = sshll.u32 %s2192_s1, 4  ;;  %s42_s5 = int_to_ptr.vmem [resolvable:$true] %s41_s5  ;;  %s55_s6 = int_to_ptr.vmem [resolvable:$true] %s54_s6 }
  0x1e   :  { %s2147_s7 = scalar_lea.vmem %s42_s5, 16384  ;;  %p2152_p11 = scmp.lt.s32.totalorder %s42_s5, %s42_s5 }
  0x1f   :  { %p2148_p10 = scmp.ne.s32.totalorder %s42_s5, %s2147_s7  ;;  %p2153_p12 = scmp.lt.s32.totalorder %s2147_s7, %s2147_s7 }
  0x21   :  { %p2154_p13 = por %p2153_p12, %p2152_p11 }
  0x23   :  { %p2155_p0 = pnand %p2154_p13, %p2148_p10 }
  0x25   :  { %2158 = shalt.err (!%p2155_p0)
}
  0x26   :  { %47 = dma.hbm_to_vmem [thread:$0]  %s2393_s2, 16384, %s42_s5, [#allocation5], %s2186_s18, %s2186_s18, %s2187_s19  }
  0x27   :  { %s2167_s0 = scalar_lea.vmem %s55_s6, 512  ;;  %p2172_p2 = scmp.lt.s32.totalorder %s55_s6, %s55_s6 }
  0x28   :  { %p2168_p1 = scmp.ne.s32.totalorder %s55_s6, %s2167_s0  ;;  %p2173_p3 = scmp.lt.s32.totalorder %s2167_s0, %s2167_s0 }
  0x2a   :  { %p2174_p4 = por %p2173_p3, %p2172_p2 }
  0x2c   :  { %p2175_p5 = pnand %p2174_p4, %p2168_p1 }
  0x2e   :  { %2178 = shalt.err (!%p2175_p5)
}
  0x2f   :  { %57 = dma.hbm_to_vmem [thread:$0]  %s2394_s3, 512, %s55_s6, [#allocation8]  }
  0x30   :  { %2179 = dma.done.wait [#allocation3], 256  }
  0x31   :  { %2180 = vsyncadd [#allocation3], 4294967040 }
  0x32   :  { %2181 = dma.done.wait [#allocation5], 20480  }
  0x33   :  { %2182 = vsyncadd [#allocation5], 4294946816 }
  0x34   :  { %2183 = dma.done.wait [#allocation8], 512  }
  0x35   :  { %2184 = vsyncadd [#allocation8], 4294966784  ;;  %v2193_v0 = vmov 0   ;;  %v1843_v1 = vld [vmem:[#allocation4 + $0xe4] ss:$16 sps:$4 sm:$0xff]   ;;  %v72_v34 = vld [vmem:[#allocation2 + $0x8] sm:$0xff] }
  0x36   :  { %318 = vmatprep.mubr.bf16.mxu0 %v2193_v0  ;;  %361 = vmatprep.mubr.bf16.mxu1 %v2193_v0  ;;  %v1845_v2 = vld [vmem:[#allocation4 + $0xec] ss:$16 sps:$4 sm:$0xff]   ;;  %v1847_v3 = vld [vmem:[#allocation4 + $0xe0] ss:$16 sps:$4 sm:$0xff]   ;;  %v1848_v4 = vld [vmem:[#allocation4 + $0xe8] ss:$16 sps:$4 sm:$0xff]   ;;  %v110_v0 = vlaneseq }
  0x37   :  { %286 = vmatprep.subr.bf16.mxu0 %v1843_v1  ;;  %329 = vmatprep.subr.bf16.mxu1 %v1845_v2  ;;  %v1849_v5 = vld [vmem:[#allocation4 + $0xc4] ss:$16 sps:$4 sm:$0xff]   ;;  %v1851_v6 = vld [vmem:[#allocation4 + $0xcc] ss:$16 sps:$4 sm:$0xff]   ;;  %v1853_v7 = vld [vmem:[#allocation4 + $0xc0] ss:$16 sps:$4 sm:$0xff]  }
  0x38   :  { %287 = vmatpush1.bf16.msra.mxu0 %v1847_v3  ;;  %330 = vmatpush1.bf16.msra.mxu1 %v1848_v4  ;;  %v1854_v8 = vld [vmem:[#allocation4 + $0xc8] ss:$16 sps:$4 sm:$0xff]   ;;  %v1855_v9 = vld [vmem:[#allocation4 + $0xa4] ss:$16 sps:$4 sm:$0xff]   ;;  %v1857_v10 = vld [vmem:[#allocation4 + $0xac] ss:$16 sps:$4 sm:$0xff]  }
  0x39   :  { %288 = vmatprep.subr.bf16.mxu0 %v1849_v5  ;;  %331 = vmatprep.subr.bf16.mxu1 %v1851_v6  ;;  %v1859_v11 = vld [vmem:[#allocation4 + $0xa0] ss:$16 sps:$4 sm:$0xff]   ;;  %v1860_v12 = vld [vmem:[#allocation4 + $0xa8] ss:$16 sps:$4 sm:$0xff]   ;;  %v1861_v13 = vld [vmem:[#allocation4 + $0x84] ss:$16 sps:$4 sm:$0xff]  }
  0x3a   :  { %v1863_v14 = vld [vmem:[#allocation4 + $0x8c] ss:$16 sps:$4 sm:$0xff]   ;;  %v1865_v15 = vld [vmem:[#allocation4 + $0x80] ss:$16 sps:$4 sm:$0xff]   ;;  %v1866_v16 = vld [vmem:[#allocation4 + $0x88] ss:$16 sps:$4 sm:$0xff]  }
  0x3b   :  { %v1867_v17 = vld [vmem:[#allocation4 + $0x64] ss:$16 sps:$4 sm:$0xff]   ;;  %v1869_v18 = vld [vmem:[#allocation4 + $0x6c] ss:$16 sps:$4 sm:$0xff]   ;;  %v1871_v19 = vld [vmem:[#allocation4 + $0x60] ss:$16 sps:$4 sm:$0xff]  }
  0x3c   :  { %289 = vmatpush1.bf16.msra.mxu0 %v1853_v7  ;;  %332 = vmatpush1.bf16.msra.mxu1 %v1854_v8  ;;  %v1872_v20 = vld [vmem:[#allocation4 + $0x68] ss:$16 sps:$4 sm:$0xff]   ;;  %v1873_v21 = vld [vmem:[#allocation4 + $0x44] ss:$16 sps:$4 sm:$0xff]   ;;  %v1875_v22 = vld [vmem:[#allocation4 + $0x4c] ss:$16 sps:$4 sm:$0xff]  }
  0x3d   :  { %290 = vmatprep.subr.bf16.mxu0 %v1855_v9  ;;  %333 = vmatprep.subr.bf16.mxu1 %v1857_v10  ;;  %v1877_v23 = vld [vmem:[#allocation4 + $0x40] ss:$16 sps:$4 sm:$0xff]   ;;  %v1878_v24 = vld [vmem:[#allocation4 + $0x48] ss:$16 sps:$4 sm:$0xff]   ;;  %v1879_v25 = vld [vmem:[#allocation4 + $0x24] ss:$16 sps:$4 sm:$0xff]  }
  0x3e   :  { %v1881_v26 = vld [vmem:[#allocation4 + $0x2c] ss:$16 sps:$4 sm:$0xff]   ;;  %v1883_v27 = vld [vmem:[#allocation4 + $0x20] ss:$16 sps:$4 sm:$0xff]   ;;  %v1884_v28 = vld [vmem:[#allocation4 + $0x28] ss:$16 sps:$4 sm:$0xff]  }
  0x3f   :  { %v1885_v29 = vld [vmem:[#allocation4 + $0x4] ss:$16 sps:$4 sm:$0xff]   ;;  %v1887_v30 = vld [vmem:[#allocation4 + $0xc] ss:$16 sps:$4 sm:$0xff]   ;;  %v1889_v31 = vld [vmem:[#allocation4] ss:$16 sps:$4 sm:$0xff]  }
  0x40   :  { %291 = vmatpush1.bf16.msra.mxu0 %v1859_v11  ;;  %334 = vmatpush1.bf16.msra.mxu1 %v1860_v12  ;;  %v1890_v32 = vld [vmem:[#allocation4 + $0x8] ss:$16 sps:$4 sm:$0xff]   ;;  %v71_v33 = vld [vmem:[#allocation2] sm:$0xff]  ;;  %v2237_v1 = vshrl.u32 %v110_v0, 7  ;;  %v2240_v3 = vld [vmem:[#allocation7] sm:$0xff]  ;;  %vm1625_vm0 = vcmask 7168  }
  0x41   :  { %292 = vmatprep.subr.bf16.mxu0 %v1861_v13  ;;  %335 = vmatprep.subr.bf16.mxu1 %v1863_v14  ;;  %v73_v35 = vpack.c.bf16 %v72_v34, %v71_v33  ;;  %v1891_v36 = vld [vmem:[#allocation6 + $0xe0] ss:$16 sps:$4 sm:$0xff]   ;;  %v1893_v37 = vld [vmem:[#allocation6 + $0xe4] ss:$16 sps:$4 sm:$0xff]   ;;  %v2244_v5 = vld [vmem:[#allocation7 + $0x8] sm:$0xff] }
  0x42   :  { %v1894_v38 = vld [vmem:[#allocation6 + $0x2e0] ss:$16 sps:$4 sm:$0xff]   ;;  %v1896_v39 = vld [vmem:[#allocation6 + $0x2e4] ss:$16 sps:$4 sm:$0xff]   ;;  %v112_v2 = vsub.s32 0, %v2237_v1  ;;  %v2249_v9 = vld [vmem:[#allocation7 + $0x18] sm:$0xff] }
  0x43   :  { %v1899_v40 = vld [vmem:[#allocation6 + $0xc4] ss:$16 sps:$4 sm:$0xff]   ;;  %v1897_v42 = vld [vmem:[#allocation6 + $0xc0] ss:$16 sps:$4 sm:$0xff]  }
  0x44   :  { %293 = vmatpush1.bf16.msra.mxu0 %v1865_v15  ;;  %336 = vmatpush1.bf16.msra.mxu1 %v1866_v16  ;;  %v1902_v41 = vld [vmem:[#allocation6 + $0x2c4] ss:$16 sps:$4 sm:$0xff]   ;;  %v1900_v43 = vld [vmem:[#allocation6 + $0x2c0] ss:$16 sps:$4 sm:$0xff]   ;;  %v113_v6 = vrot.slane %v2240_v3, %v112_v2  ;;  %v117_v8 = vrot.slane %v2244_v5, %v112_v2  ;;  %v125_v15 = vrot.slane %v2249_v9, %v112_v2 }
  0x45   :  { %294 = vmatprep.subr.bf16.mxu0 %v1867_v17  ;;  %337 = vmatprep.subr.bf16.mxu1 %v1869_v18  ;;  %v1905_v44 = vld [vmem:[#allocation6 + $0xa4] ss:$16 sps:$4 sm:$0xff]   ;;  %v1903_v46 = vld [vmem:[#allocation6 + $0xa0] ss:$16 sps:$4 sm:$0xff]  }
  0x46   :  { %v1908_v45 = vld [vmem:[#allocation6 + $0x2a4] ss:$16 sps:$4 sm:$0xff]   ;;  %v1906_v47 = vld [vmem:[#allocation6 + $0x2a0] ss:$16 sps:$4 sm:$0xff]  }
  0x47   :  { %v1911_v48 = vld [vmem:[#allocation6 + $0x84] ss:$16 sps:$4 sm:$0xff]   ;;  %v1909_v50 = vld [vmem:[#allocation6 + $0x80] ss:$16 sps:$4 sm:$0xff]  }
  0x48   :  { %295 = vmatpush1.bf16.msra.mxu0 %v1871_v19  ;;  %338 = vmatpush1.bf16.msra.mxu1 %v1872_v20  ;;  %v1914_v49 = vld [vmem:[#allocation6 + $0x284] ss:$16 sps:$4 sm:$0xff]   ;;  %v1912_v51 = vld [vmem:[#allocation6 + $0x280] ss:$16 sps:$4 sm:$0xff]  }
  0x49   :  { %296 = vmatprep.subr.bf16.mxu0 %v1873_v21  ;;  %339 = vmatprep.subr.bf16.mxu1 %v1875_v22  ;;  %v1917_v52 = vld [vmem:[#allocation6 + $0x64] ss:$16 sps:$4 sm:$0xff]   ;;  %v1915_v54 = vld [vmem:[#allocation6 + $0x60] ss:$16 sps:$4 sm:$0xff]  }
  0x4a   :  { %v1920_v53 = vld [vmem:[#allocation6 + $0x264] ss:$16 sps:$4 sm:$0xff]   ;;  %v1918_v55 = vld [vmem:[#allocation6 + $0x260] ss:$16 sps:$4 sm:$0xff]  }
  0x4b   :  { %v1923_v56 = vld [vmem:[#allocation6 + $0x44] ss:$16 sps:$4 sm:$0xff]   ;;  %v1921_v58 = vld [vmem:[#allocation6 + $0x40] ss:$16 sps:$4 sm:$0xff]  }
  0x4c   :  { %297 = vmatpush1.bf16.msra.mxu0 %v1877_v23  ;;  %340 = vmatpush1.bf16.msra.mxu1 %v1878_v24  ;;  %v1926_v57 = vld [vmem:[#allocation6 + $0x244] ss:$16 sps:$4 sm:$0xff]   ;;  %v1924_v59 = vld [vmem:[#allocation6 + $0x240] ss:$16 sps:$4 sm:$0xff]  }
  0x4d   :  { %298 = vmatprep.subr.bf16.mxu0 %v1879_v25  ;;  %341 = vmatprep.subr.bf16.mxu1 %v1881_v26  ;;  %v1929_v60 = vld [vmem:[#allocation6 + $0x24] ss:$16 sps:$4 sm:$0xff]   ;;  %v1927_v62 = vld [vmem:[#allocation6 + $0x20] ss:$16 sps:$4 sm:$0xff]  }
  0x4e   :  { %v1932_v61 = vld [vmem:[#allocation6 + $0x224] ss:$16 sps:$4 sm:$0xff]   ;;  %v1930_v63 = vld [vmem:[#allocation6 + $0x220] ss:$16 sps:$4 sm:$0xff]  }
  0x4f   :  { %v2242_v4 = vld [vmem:[#allocation7 + $0x10] sm:$0xff] }
  0x50   :  { %299 = vmatpush1.bf16.msra.mxu0 %v1883_v27  ;;  %342 = vmatpush1.bf16.msra.mxu1 %v1884_v28  ;;  %v121_v7 = vrot.slane %v2242_v4, %v112_v2  ;;  %v1962_v0 = vld [vmem:[#allocation6 + $0x384] ss:$16 sps:$4 sm:$0xff]   ;;  %v1957_v2 = vld [vmem:[#allocation6 + $0x180] ss:$16 sps:$4 sm:$0xff]  }
  0x51   :  { %300 = vmatprep.subr.bf16.mxu0 %v1885_v29  ;;  %343 = vmatprep.subr.bf16.mxu1 %v1887_v30 }
  0x54   :  { %301 = vmatpush1.bf16.msra.mxu0 %v1889_v31  ;;  %344 = vmatpush1.bf16.msra.mxu1 %v1890_v32 }
  0x55   :  { %1281 = vmatprep.subr.bf16.mxu0 %v1893_v37  ;;  %1324 = vmatprep.subr.bf16.mxu1 %v1896_v39 }
  0x57   :  { %319 = vmatmul.mubr.bf16.vlgmr.msra.gmra.mxu0 %v73_v35  ;;  %362 = vmatmul.mubr.bf16.vlgmr.msra.gmra.mxu1 %v73_v35 }
  0x58   :  { %1282 = vmatpush1.bf16.msra.mxu0 %v1891_v36  ;;  %1325 = vmatpush1.bf16.msra.mxu1 %v1894_v38 }
  0x59   :  { %1283 = vmatprep.subr.bf16.mxu0 %v1899_v40  ;;  %1326 = vmatprep.subr.bf16.mxu1 %v1902_v41 }
  0x5c   :  { %1284 = vmatpush1.bf16.msra.mxu0 %v1897_v42  ;;  %1327 = vmatpush1.bf16.msra.mxu1 %v1900_v43 }
  0x5d   :  { %1285 = vmatprep.subr.bf16.mxu0 %v1905_v44  ;;  %1328 = vmatprep.subr.bf16.mxu1 %v1908_v45 }
  0x60   :  { %1286 = vmatpush1.bf16.msra.mxu0 %v1903_v46  ;;  %1329 = vmatpush1.bf16.msra.mxu1 %v1906_v47  ;;  %v1935_v47 = vld [vmem:[#allocation6 + $0x4] ss:$16 sps:$4 sm:$0xff]  }
  0x61   :  { %1287 = vmatprep.subr.bf16.mxu0 %v1911_v48  ;;  %1330 = vmatprep.subr.bf16.mxu1 %v1914_v49  ;;  %v1938_v48 = vld [vmem:[#allocation6 + $0x204] ss:$16 sps:$4 sm:$0xff]   ;;  %v1933_v49 = vld [vmem:[#allocation6] ss:$16 sps:$4 sm:$0xff]  }
  0x64   :  { %1288 = vmatpush1.bf16.msra.mxu0 %v1909_v50  ;;  %1331 = vmatpush1.bf16.msra.mxu1 %v1912_v51  ;;  %v1936_v50 = vld [vmem:[#allocation6 + $0x200] ss:$16 sps:$4 sm:$0xff]   ;;  %v1941_v51 = vld [vmem:[#allocation6 + $0x1e4] ss:$16 sps:$4 sm:$0xff]  }
  0x65   :  { %1289 = vmatprep.subr.bf16.mxu0 %v1917_v52  ;;  %1332 = vmatprep.subr.bf16.mxu1 %v1920_v53  ;;  %v1944_v52 = vld [vmem:[#allocation6 + $0x3e4] ss:$16 sps:$4 sm:$0xff]   ;;  %v1939_v53 = vld [vmem:[#allocation6 + $0x1e0] ss:$16 sps:$4 sm:$0xff]  }
  0x68   :  { %1290 = vmatpush1.bf16.msra.mxu0 %v1915_v54  ;;  %1333 = vmatpush1.bf16.msra.mxu1 %v1918_v55  ;;  %v1942_v54 = vld [vmem:[#allocation6 + $0x3e0] ss:$16 sps:$4 sm:$0xff]   ;;  %v1947_v55 = vld [vmem:[#allocation6 + $0x1c4] ss:$16 sps:$4 sm:$0xff]  }
  0x69   :  { %1291 = vmatprep.subr.bf16.mxu0 %v1923_v56  ;;  %1334 = vmatprep.subr.bf16.mxu1 %v1926_v57  ;;  %v1950_v56 = vld [vmem:[#allocation6 + $0x3c4] ss:$16 sps:$4 sm:$0xff]   ;;  %v1945_v57 = vld [vmem:[#allocation6 + $0x1c0] ss:$16 sps:$4 sm:$0xff]  }
  0x6c   :  { %1292 = vmatpush1.bf16.msra.mxu0 %v1921_v58  ;;  %1335 = vmatpush1.bf16.msra.mxu1 %v1924_v59  ;;  %v1948_v58 = vld [vmem:[#allocation6 + $0x3c0] ss:$16 sps:$4 sm:$0xff]  }
  0x6d   :  { %1293 = vmatprep.subr.bf16.mxu0 %v1929_v60  ;;  %1336 = vmatprep.subr.bf16.mxu1 %v1932_v61  ;;  %v1951_v59 = vld [vmem:[#allocation6 + $0x1a0] ss:$16 sps:$4 sm:$0xff]   ;;  %v1953_v60 = vld [vmem:[#allocation6 + $0x1a4] ss:$16 sps:$4 sm:$0xff]  }
  0x6e   :  { %v1954_v61 = vld [vmem:[#allocation6 + $0x3a0] ss:$16 sps:$4 sm:$0xff]  }
  0x70   :  { %1294 = vmatpush1.bf16.msra.mxu0 %v1927_v62  ;;  %1337 = vmatpush1.bf16.msra.mxu1 %v1930_v63  ;;  %v1956_v62 = vld [vmem:[#allocation6 + $0x3a4] ss:$16 sps:$4 sm:$0xff]  }
  0x71   :  { %1295 = vmatprep.subr.bf16.mxu0 %v1935_v47  ;;  %1338 = vmatprep.subr.bf16.mxu1 %v1938_v48  ;;  %v1959_v63 = vld [vmem:[#allocation6 + $0x184] ss:$16 sps:$4 sm:$0xff]   ;;  %v415_v48 = vsub.s32 1, %v2237_v1 }
  0x74   :  { %1296 = vmatpush1.bf16.msra.mxu0 %v1933_v49  ;;  %1339 = vmatpush1.bf16.msra.mxu1 %v1936_v50  ;;  %v455_v49 = vsub.s32 2, %v2237_v1  ;;  %v420_v50 = vrot.slane %v2244_v5, %v415_v48 }
  0x75   :  { %1297 = vmatprep.subr.bf16.mxu0 %v1941_v51  ;;  %1340 = vmatprep.subr.bf16.mxu1 %v1944_v52  ;;  %v428_v51 = vrot.slane %v2249_v9, %v415_v48  ;;  %v416_v52 = vrot.slane %v2240_v3, %v415_v48 }
  0x78   :  { %1298 = vmatpush2.bf16.msra.mxu0 %v1939_v53  ;;  %1341 = vmatpush2.bf16.msra.mxu1 %v1942_v54  ;;  %v424_v53 = vrot.slane %v2242_v4, %v415_v48 }
  0x79   :  { %1299 = vmatprep.subr.bf16.mxu0 %v1947_v55  ;;  %1342 = vmatprep.subr.bf16.mxu1 %v1950_v56  ;;  %v460_v55 = vrot.slane %v2244_v5, %v455_v49  ;;  %v468_v56 = vrot.slane %v2249_v9, %v455_v49 }
  0x7c   :  { %1300 = vmatpush2.bf16.msra.mxu0 %v1945_v57  ;;  %1343 = vmatpush2.bf16.msra.mxu1 %v1948_v58 }
  0x7d   :  { %1301 = vmatprep.subr.bf16.mxu0 %v1953_v60  ;;  %1344 = vmatprep.subr.bf16.mxu1 %v1956_v62 }
  0x80   :  { %1302 = vmatpush2.bf16.msra.mxu0 %v1951_v59  ;;  %1345 = vmatpush2.bf16.msra.mxu1 %v1954_v61  ;;  %v456_v61 = vrot.slane %v2240_v3, %v455_v49 }
  0x81   :  { %1303 = vmatprep.subr.bf16.mxu0 %v1959_v63  ;;  %1346 = vmatprep.subr.bf16.mxu1 %v1962_v0  ;;  %v464_v0 = vrot.slane %v2242_v4, %v455_v49 }
  0x84   :  { %1304 = vmatpush2.bf16.msra.mxu0 %v1957_v2 }
 0x117   :  { %v320_v10 = vpop.f32.mrf.mxu0  ;;  %v363_v11 = vpop.f32.mrf.mxu1 }
 0x118   :  { %v2251_v12 = vadd.f32 %v320_v10, %v113_v6  ;;  %v2253_v13 = vadd.f32 %v363_v11, %v121_v7  ;;  %v1963_v10 = vld [vmem:[#allocation6 + $0x160] ss:$16 sps:$4 sm:$0xff]  }
 0x119   :  { %v322_v14 = vpop.f32.mrf.mxu0  ;;  %v365_v16 = vpop.f32.mrf.mxu1  ;;  %v1966_v11 = vld [vmem:[#allocation6 + $0x360] ss:$16 sps:$4 sm:$0xff]  }
 0x11a   :  { %v2256_v17 = vadd.f32 %v322_v14, %v117_v8  ;;  %v385_v23 = vmul.f32 %v2251_v12, %v2251_v12  ;;  %v2266_v24 = vadd.f32 %v365_v16, %v125_v15  ;;  %v387_v27 = vmul.f32 %v2253_v13, %v2253_v13  ;;  %v1971_v14 = vld [vmem:[#allocation6 + $0x144] ss:$16 sps:$4 sm:$0xff]   ;;  %v1969_v16 = vld [vmem:[#allocation6 + $0x140] ss:$16 sps:$4 sm:$0xff]  }
 0x11b   :  { %v324_v18 = vpop.f32.mrf.mxu0  ;;  %v367_v19 = vpop.f32.mrf.mxu1 }
 0x11c   :  { %v386_v20 = vmul.f32 %v2256_v17, %v2256_v17  ;;  %v2260_v21 = vadd.f32 %v324_v18, %v113_v6  ;;  %v372_v22 = vadd.f32 %v2256_v17, %v2251_v12  ;;  %v2270_v28 = vadd.f32 %v367_v19, %v121_v7  ;;  %v1960_v6 = vld [vmem:[#allocation6 + $0x380] ss:$16 sps:$4 sm:$0xff]   ;;  %v1965_v7 = vld [vmem:[#allocation6 + $0x164] ss:$16 sps:$4 sm:$0xff]  }
 0x11d   :  { %v326_v25 = vpop.f32.mrf.mxu0  ;;  %v369_v26 = vpop.f32.mrf.mxu1  ;;  %v388_v37 = vmul.f32 %v2266_v24, %v2266_v24  ;;  %1347 = vmatpush2.bf16.msra.mxu1 %v1960_v6  ;;  %1305 = vmatprep.subr.bf16.mxu0 %v1965_v7  ;;  %v1972_v18 = vld [vmem:[#allocation6 + $0x340] ss:$16 sps:$4 sm:$0xff]   ;;  %v1977_v19 = vld [vmem:[#allocation6 + $0x124] ss:$16 sps:$4 sm:$0xff]  }
 0x11e   :  { %v2272_v29 = vadd.f32 %v326_v25, %v117_v8  ;;  %v373_v30 = vadd.f32 %v372_v22, %v2253_v13  ;;  %v393_v31 = vadd.f32 %v386_v20, %v385_v23  ;;  %v389_v32 = vmul.f32 %v2260_v21, %v2260_v21  ;;  %v1968_v8 = vld [vmem:[#allocation6 + $0x364] ss:$16 sps:$4 sm:$0xff]   ;;  %1306 = vmatpush2.bf16.msra.mxu0 %v1963_v10  ;;  %v1975_v22 = vld [vmem:[#allocation6 + $0x120] ss:$16 sps:$4 sm:$0xff]  }
 0x11f   :  { %v2281_v35 = vadd.f32 %v369_v26, %v125_v15  ;;  %v391_v39 = vmul.f32 %v2270_v28, %v2270_v28  ;;  %1348 = vmatprep.subr.bf16.mxu1 %v1968_v8  ;;  %v1974_v15 = vld [vmem:[#allocation6 + $0x344] ss:$16 sps:$4 sm:$0xff]   ;;  %1307 = vmatprep.subr.bf16.mxu0 %v1971_v14  ;;  %v1978_v23 = vld [vmem:[#allocation6 + $0x320] ss:$16 sps:$4 sm:$0xff]  }
 0x120   :  { %v377_v33 = vadd.f32 %v2272_v29, %v2260_v21  ;;  %v390_v34 = vmul.f32 %v2272_v29, %v2272_v29  ;;  %v374_v36 = vadd.f32 %v373_v30, %v2266_v24  ;;  %v394_v38 = vadd.f32 %v393_v31, %v387_v27  ;;  %v1980_v20 = vld [vmem:[#allocation6 + $0x324] ss:$16 sps:$4 sm:$0xff]   ;;  %v1981_v27 = vld [vmem:[#allocation6 + $0x100] ss:$16 sps:$4 sm:$0xff]   ;;  %v1989_v31 = vld [vmem:[#allocation6 + $0xec] ss:$16 sps:$4 sm:$0xff]  }
 0x121   :  { %v392_v44 = vmul.f32 %v2281_v35, %v2281_v35  ;;  %1349 = vmatpush2.bf16.msra.mxu1 %v1966_v11  ;;  %v1983_v25 = vld [vmem:[#allocation6 + $0x104] ss:$16 sps:$4 sm:$0xff]   ;;  %v1984_v30 = vld [vmem:[#allocation6 + $0x300] ss:$16 sps:$4 sm:$0xff]  }
 0x122   :  { %v378_v40 = vadd.f32 %v377_v33, %v2270_v28  ;;  %v398_v41 = vadd.f32 %v390_v34, %v389_v32  ;;  %375 = vadd.xlane.f32.xlu0 %v374_v36  ;;  %v395_v42 = vadd.f32 %v394_v38, %v388_v37  ;;  %1350 = vmatprep.subr.bf16.mxu1 %v1974_v15  ;;  %v1986_v26 = vld [vmem:[#allocation6 + $0x304] ss:$16 sps:$4 sm:$0xff]   ;;  %v1992_v32 = vld [vmem:[#allocation6 + $0x2ec] ss:$16 sps:$4 sm:$0xff]  }
 0x123   :  { %1308 = vmatpush2.bf16.msra.mxu0 %v1969_v16 }
 0x124   :  { %v379_v43 = vadd.f32 %v378_v40, %v2281_v35  ;;  %v399_v45 = vadd.f32 %v398_v41, %v391_v39  ;;  %396 = vadd.xlane.f32.xlu1 %v395_v42  ;;  %1309 = vmatprep.subr.bf16.mxu0 %v1977_v19 }
 0x125   :  { %1351 = vmatpush2.bf16.msra.mxu1 %v1972_v18 }
 0x126   :  { %v400_v46 = vadd.f32 %v399_v45, %v392_v44  ;;  %380 = vadd.xlane.f32.xlu0 %v379_v43  ;;  %1352 = vmatprep.subr.bf16.mxu1 %v1980_v20 }
 0x127   :  { %1310 = vmatpush2.bf16.msra.mxu0 %v1975_v22 }
 0x128   :  { %401 = vadd.xlane.f32.xlu1 %v400_v46  ;;  %1311 = vmatprep.subr.bf16.mxu0 %v1983_v25 }
 0x129   :  { %1353 = vmatpush2.bf16.msra.mxu1 %v1978_v23 }
 0x12a   :  { %1354 = vmatprep.subr.bf16.mxu1 %v1986_v26 }
 0x12b   :  { %1312 = vmatpush2.bf16.msra.mxu0 %v1981_v27 }
 0x12c   :  { %1367 = vmatprep.subr.bf16.mxu0 %v1989_v31 }
 0x12d   :  { %1355 = vmatpush2.bf16.msra.mxu1 %v1984_v30 }
 0x12e   :  { %1410 = vmatprep.subr.bf16.mxu1 %v1992_v32 }
 0x1ab   :  { %v376_v33 = vpop.xlane.xlu0 %375 }
 0x1ac   :  { %v383_v34 = vmul.f32 0.001953125, %v376_v33 }
 0x1ad   :  { %v397_v36 = vpop.xlane.xlu1 %396 }
 0x1ae   :  { %v403_v37 = vmul.f32 0.001953125, %v397_v36  ;;  %v405_v38 = vmul.f32 %v383_v34, %v383_v34 }
 0x1af   :  { %v381_v39 = vpop.xlane.xlu0 %380 }
 0x1b0   :  { %v407_v40 = vsub.f32 %v403_v37, %v405_v38  ;;  %v384_v41 = vmul.f32 0.001953125, %v381_v39 }
 0x1b1   :  { %v402_v42 = vpop.xlane.xlu1 %401 }
 0x1b2   :  { %v409_v43 = vadd.f32 1e-05, %v407_v40  ;;  %v404_v44 = vmul.f32 0.001953125, %v402_v42  ;;  %v406_v45 = vmul.f32 %v384_v41, %v384_v41 }
 0x1b4   :  { %2083 = vrsqrt.f32 %v409_v43  ;;  %v408_v46 = vsub.f32 %v404_v44, %v406_v45 }
 0x1b6   :  { %v410_v47 = vadd.f32 1e-05, %v408_v46 }
 0x1b8   :  { %2085 = vrsqrt.f32 %v410_v47 }
 0x1c1   :  { %v2084_v54 = vpop.eup %2083 }
 0x1c2   :  { %v430_v57 = vmul.f32 %v2084_v54, %v420_v50  ;;  %v432_v58 = vmul.f32 %v2084_v54, %v428_v51  ;;  %v429_v59 = vmul.f32 %v2084_v54, %v416_v52  ;;  %v431_v60 = vmul.f32 %v2084_v54, %v424_v53  ;;  %v1995_v54 = vld [vmem:[#allocation6 + $0xcc] ss:$16 sps:$4 sm:$0xff]  }
 0x1c4   :  { %v446_v62 = vmul.f32 %v430_v57, %v383_v34  ;;  %v448_v63 = vmul.f32 %v432_v58, %v383_v34  ;;  %v438_v6 = vmul.f32 %v430_v57, %v2256_v17  ;;  %v445_v7 = vmul.f32 %v429_v59, %v383_v34  ;;  %v1993_v57 = vld [vmem:[#allocation6 + $0xc8] ss:$16 sps:$4 sm:$0xff]  }
 0x1c5   :  { %v2086_v2 = vpop.eup %2085  ;;  %v447_v8 = vmul.f32 %v431_v60, %v383_v34  ;;  %v440_v16 = vmul.f32 %v432_v58, %v2266_v24  ;;  %v437_v23 = vmul.f32 %v429_v59, %v2251_v12  ;;  %v439_v25 = vmul.f32 %v431_v60, %v2253_v13  ;;  %v2001_v58 = vld [vmem:[#allocation6 + $0xac] ss:$16 sps:$4 sm:$0xff]   ;;  %v1996_v59 = vld [vmem:[#allocation6 + $0x2c8] ss:$16 sps:$4 sm:$0xff]  }
 0x1c6   :  { %v434_v10 = vmul.f32 %v2086_v2, %v420_v50  ;;  %v470_v11 = vsub.f32 %v460_v55, %v446_v62  ;;  %v436_v14 = vmul.f32 %v2086_v2, %v428_v51  ;;  %v472_v15 = vsub.f32 %v468_v56, %v448_v63  ;;  %v2004_v60 = vld [vmem:[#allocation6 + $0x2ac] ss:$16 sps:$4 sm:$0xff]   ;;  %v2002_v63 = vld [vmem:[#allocation6 + $0x2a8] ss:$16 sps:$4 sm:$0xff]  }
 0x1c7   :  { %v433_v18 = vmul.f32 %v2086_v2, %v416_v52  ;;  %v469_v19 = vsub.f32 %v456_v61, %v445_v7  ;;  %v435_v20 = vmul.f32 %v2086_v2, %v424_v53  ;;  %v471_v26 = vsub.f32 %v464_v0, %v447_v8  ;;  %v2007_v62 = vld [vmem:[#allocation6 + $0x8c] ss:$16 sps:$4 sm:$0xff]   ;;  %v2005_v2 = vld [vmem:[#allocation6 + $0x88] ss:$16 sps:$4 sm:$0xff]  }
 0x1c8   :  { %v450_v22 = vmul.f32 %v434_v10, %v384_v41  ;;  %v442_v27 = vmul.f32 %v434_v10, %v2272_v29  ;;  %v478_v17 = vadd.f32 %v470_v11, %v438_v6  ;;  %v452_v30 = vmul.f32 %v436_v14, %v384_v41  ;;  %v2013_v6 = vld [vmem:[#allocation6 + $0x6c] ss:$16 sps:$4 sm:$0xff]   ;;  %v2008_v7 = vld [vmem:[#allocation6 + $0x288] ss:$16 sps:$4 sm:$0xff]  }
 0x1c9   :  { %v449_v31 = vmul.f32 %v433_v18, %v384_v41  ;;  %v444_v33 = vmul.f32 %v436_v14, %v2281_v35  ;;  %v480_v34 = vadd.f32 %v472_v15, %v440_v16  ;;  %v441_v24 = vmul.f32 %v433_v18, %v2260_v21  ;;  %v1987_v21 = vld [vmem:[#allocation6 + $0xe8] ss:$16 sps:$4 sm:$0xff]   ;;  %v2016_v8 = vld [vmem:[#allocation6 + $0x26c] ss:$16 sps:$4 sm:$0xff]  }
 0x1ca   :  { %v474_v32 = vsub.f32 %v460_v55, %v450_v22  ;;  %v476_v36 = vsub.f32 %v468_v56, %v452_v30  ;;  %v477_v38 = vadd.f32 %v469_v19, %v437_v23  ;;  %v451_v39 = vmul.f32 %v435_v20, %v384_v41  ;;  %v1998_v56 = vld [vmem:[#allocation6 + $0x2cc] ss:$16 sps:$4 sm:$0xff]   ;;  %v2011_v10 = vld [vmem:[#allocation6 + $0x68] ss:$16 sps:$4 sm:$0xff]  }
 0x1cb   :  { %v473_v37 = vsub.f32 %v456_v61, %v449_v31  ;;  %v443_v12 = vmul.f32 %v435_v20, %v2270_v28  ;;  %v479_v29 = vadd.f32 %v471_v26, %v439_v25  ;;  %v486_v44 = vmax.f32 %v478_v17, 0.0  ;;  %v1990_v28 = vld [vmem:[#allocation6 + $0x2e8] ss:$16 sps:$4 sm:$0xff]   ;;  %v2019_v11 = vld [vmem:[#allocation6 + $0x4c] ss:$16 sps:$4 sm:$0xff]  }
 0x1cc   :  { %v482_v40 = vadd.f32 %v474_v32, %v442_v27  ;;  %v484_v13 = vadd.f32 %v476_v36, %v444_v33  ;;  %v475_v43 = vsub.f32 %v464_v0, %v451_v39  ;;  %v488_v46 = vmax.f32 %v480_v34, 0.0  ;;  %v1999_v61 = vld [vmem:[#allocation6 + $0xa8] ss:$16 sps:$4 sm:$0xff]   ;;  %v2010_v0 = vld [vmem:[#allocation6 + $0x28c] ss:$16 sps:$4 sm:$0xff]  }
 0x1cd   :  { %v481_v42 = vadd.f32 %v473_v37, %v441_v24  ;;  %v485_v48 = vmax.f32 %v477_v38, 0.0  ;;  %v487_v41 = vmax.f32 %v479_v29, 0.0  ;;  %v2014_v14 = vld [vmem:[#allocation6 + $0x268] ss:$16 sps:$4 sm:$0xff]   ;;  %v2022_v15 = vld [vmem:[#allocation6 + $0x24c] ss:$16 sps:$4 sm:$0xff]  }
 0x1ce   :  { %v490_v45 = vmax.f32 %v482_v40, 0.0  ;;  %v492_v47 = vmax.f32 %v484_v13, 0.0  ;;  %v483_v49 = vadd.f32 %v475_v43, %v443_v12  ;;  %v2017_v16 = vld [vmem:[#allocation6 + $0x48] ss:$16 sps:$4 sm:$0xff]   ;;  %v2025_v18 = vld [vmem:[#allocation6 + $0x2c] ss:$16 sps:$4 sm:$0xff]  }
 0x1cf   :  { %v489_v35 = vmax.f32 %v481_v42, 0.0  ;;  %v2020_v19 = vld [vmem:[#allocation6 + $0x248] ss:$16 sps:$4 sm:$0xff]   ;;  %v2028_v20 = vld [vmem:[#allocation6 + $0x22c] ss:$16 sps:$4 sm:$0xff]  }
 0x1d0   :  { %v494_v50 = vpack.c.bf16 %v490_v45, %v486_v44  ;;  %v496_v51 = vpack.c.bf16 %v492_v47, %v488_v46  ;;  %v491_v53 = vmax.f32 %v483_v49, 0.0  ;;  %v2023_v22 = vld [vmem:[#allocation6 + $0x28] ss:$16 sps:$4 sm:$0xff]   ;;  %v2031_v23 = vld [vmem:[#allocation6 + $0xc] ss:$16 sps:$4 sm:$0xff]  }
 0x1d1   :  { %v2310_v52 = vpack.c.bf16 %v489_v35, %v485_v48  ;;  %v2026_v25 = vld [vmem:[#allocation6 + $0x228] ss:$16 sps:$4 sm:$0xff]   ;;  %v2034_v26 = vld [vmem:[#allocation6 + $0x20c] ss:$16 sps:$4 sm:$0xff]  }
 0x1d2   :  { %1313 = vmatprep.mubr.bf16.mxu0 %v494_v50  ;;  %1356 = vmatprep.mubr.bf16.mxu1 %v496_v51  ;;  %v2313_v55 = vpack.c.bf16 %v491_v53, %v487_v41  ;;  %v2029_v27 = vld [vmem:[#allocation6 + $0x8] ss:$16 sps:$4 sm:$0xff]   ;;  %v2037_v17 = vld [vmem:[#allocation6 + $0x1ec] ss:$16 sps:$4 sm:$0xff]  }
 0x1d3   :  { %1314 = vmatmul.mubr.bf16.vlgmr.msra.gmra.mxu0 %v2310_v52  ;;  %v2032_v30 = vld [vmem:[#allocation6 + $0x208] ss:$16 sps:$4 sm:$0xff]   ;;  %v2040_v31 = vld [vmem:[#allocation6 + $0x3ec] ss:$16 sps:$4 sm:$0xff]  }
 0x1d4   :  { %1368 = vmatpush1.bf16.msra.mxu0 %v1987_v21  ;;  %1399 = vmatprep.mubr.bf16.mxu0 %v494_v50  ;;  %v2035_v32 = vld [vmem:[#allocation6 + $0x1e8] ss:$16 sps:$4 sm:$0xff]   ;;  %v2043_v33 = vld [vmem:[#allocation6 + $0x1cc] ss:$16 sps:$4 sm:$0xff]  }
 0x1d5   :  { %1357 = vmatmul.mubr.bf16.vlgmr.msra.gmra.mxu1 %v2313_v55  ;;  %1369 = vmatprep.subr.bf16.mxu0 %v1995_v54  ;;  %v2038_v34 = vld [vmem:[#allocation6 + $0x3e8] ss:$16 sps:$4 sm:$0xff]   ;;  %v2046_v24 = vld [vmem:[#allocation6 + $0x3cc] ss:$16 sps:$4 sm:$0xff]  }
 0x1d6   :  { %1411 = vmatpush1.bf16.msra.mxu1 %v1990_v28  ;;  %1442 = vmatprep.mubr.bf16.mxu1 %v496_v51  ;;  %v2041_v36 = vld [vmem:[#allocation6 + $0x1c8] ss:$16 sps:$4 sm:$0xff]   ;;  %v2049_v37 = vld [vmem:[#allocation6 + $0x1ac] ss:$16 sps:$4 sm:$0xff]  }
 0x1d7   :  { %1412 = vmatprep.subr.bf16.mxu1 %v1998_v56  ;;  %v2044_v38 = vld [vmem:[#allocation6 + $0x3c8] ss:$16 sps:$4 sm:$0xff]   ;;  %v2052_v39 = vld [vmem:[#allocation6 + $0x3ac] ss:$16 sps:$4 sm:$0xff]  }
 0x1d8   :  { %1370 = vmatpush1.bf16.msra.mxu0 %v1993_v57  ;;  %v2047_v40 = vld [vmem:[#allocation6 + $0x1a8] ss:$16 sps:$4 sm:$0xff]   ;;  %v2055_v12 = vld [vmem:[#allocation6 + $0x18c] ss:$16 sps:$4 sm:$0xff]  }
 0x1d9   :  { %1371 = vmatprep.subr.bf16.mxu0 %v2001_v58  ;;  %v2050_v13 = vld [vmem:[#allocation6 + $0x3a8] ss:$16 sps:$4 sm:$0xff]   ;;  %v2058_v42 = vld [vmem:[#allocation6 + $0x38c] ss:$16 sps:$4 sm:$0xff]  }
 0x1da   :  { %1413 = vmatpush1.bf16.msra.mxu1 %v1996_v59  ;;  %v2053_v43 = vld [vmem:[#allocation6 + $0x188] ss:$16 sps:$4 sm:$0xff]   ;;  %v2061_v29 = vld [vmem:[#allocation6 + $0x16c] ss:$16 sps:$4 sm:$0xff]  }
 0x1db   :  { %1414 = vmatprep.subr.bf16.mxu1 %v2004_v60  ;;  %v2056_v44 = vld [vmem:[#allocation6 + $0x388] ss:$16 sps:$4 sm:$0xff]   ;;  %v2064_v45 = vld [vmem:[#allocation6 + $0x36c] ss:$16 sps:$4 sm:$0xff]  }
 0x1dc   :  { %1372 = vmatpush1.bf16.msra.mxu0 %v1999_v61  ;;  %v2059_v46 = vld [vmem:[#allocation6 + $0x168] ss:$16 sps:$4 sm:$0xff]   ;;  %v2067_v47 = vld [vmem:[#allocation6 + $0x14c] ss:$16 sps:$4 sm:$0xff]   ;;  %v627_v61 = vsub.s32 3, %v2237_v1 }
 0x1dd   :  { %1373 = vmatprep.subr.bf16.mxu0 %v2007_v62  ;;  %v2062_v48 = vld [vmem:[#allocation6 + $0x368] ss:$16 sps:$4 sm:$0xff]   ;;  %v2070_v35 = vld [vmem:[#allocation6 + $0x34c] ss:$16 sps:$4 sm:$0xff]  }
 0x1de   :  { %1415 = vmatpush1.bf16.msra.mxu1 %v2002_v63  ;;  %v2065_v49 = vld [vmem:[#allocation6 + $0x148] ss:$16 sps:$4 sm:$0xff]   ;;  %v2073_v50 = vld [vmem:[#allocation6 + $0x12c] ss:$16 sps:$4 sm:$0xff]   ;;  %v632_v63 = vrot.slane %v2244_v5, %v627_v61 }
 0x1df   :  { %1416 = vmatprep.subr.bf16.mxu1 %v2010_v0  ;;  %v2068_v21 = vld [vmem:[#allocation6 + $0x348] ss:$16 sps:$4 sm:$0xff]   ;;  %v2076_v51 = vld [vmem:[#allocation6 + $0x32c] ss:$16 sps:$4 sm:$0xff]  }
 0x1e0   :  { %1374 = vmatpush1.bf16.msra.mxu0 %v2005_v2  ;;  %v2071_v41 = vld [vmem:[#allocation6 + $0x128] ss:$16 sps:$4 sm:$0xff]   ;;  %v2079_v53 = vld [vmem:[#allocation6 + $0x10c] ss:$16 sps:$4 sm:$0xff]   ;;  %v628_v2 = vrot.slane %v2240_v3, %v627_v61 }
 0x1e1   :  { %1375 = vmatprep.subr.bf16.mxu0 %v2013_v6  ;;  %v2074_v54 = vld [vmem:[#allocation6 + $0x328] ss:$16 sps:$4 sm:$0xff]   ;;  %v2082_v28 = vld [vmem:[#allocation6 + $0x30c] ss:$16 sps:$4 sm:$0xff]  }
 0x1e2   :  { %1417 = vmatpush1.bf16.msra.mxu1 %v2008_v7  ;;  %v2077_v56 = vld [vmem:[#allocation6 + $0x108] ss:$16 sps:$4 sm:$0xff]  }
 0x1e3   :  { %1418 = vmatprep.subr.bf16.mxu1 %v2016_v8  ;;  %v2080_v57 = vld [vmem:[#allocation6 + $0x308] ss:$16 sps:$4 sm:$0xff]  }
 0x1e4   :  { %1376 = vmatpush1.bf16.msra.mxu0 %v2011_v10 }
 0x1e5   :  { %1377 = vmatprep.subr.bf16.mxu0 %v2019_v11 }
 0x1e6   :  { %1419 = vmatpush1.bf16.msra.mxu1 %v2014_v14 }
 0x1e7   :  { %1420 = vmatprep.subr.bf16.mxu1 %v2022_v15 }
 0x1e8   :  { %1378 = vmatpush1.bf16.msra.mxu0 %v2017_v16  ;;  %v640_v16 = vrot.slane %v2249_v9, %v627_v61 }
 0x1e9   :  { %1379 = vmatprep.subr.bf16.mxu0 %v2025_v18 }
 0x1ea   :  { %1421 = vmatpush1.bf16.msra.mxu1 %v2020_v19 }
 0x1eb   :  { %1422 = vmatprep.subr.bf16.mxu1 %v2028_v20 }
 0x1ec   :  { %1380 = vmatpush1.bf16.msra.mxu0 %v2023_v22 }
 0x1ed   :  { %1381 = vmatprep.subr.bf16.mxu0 %v2031_v23 }
 0x1ee   :  { %1423 = vmatpush1.bf16.msra.mxu1 %v2026_v25 }
 0x1ef   :  { %1424 = vmatprep.subr.bf16.mxu1 %v2034_v26 }
 0x1f0   :  { %1382 = vmatpush1.bf16.msra.mxu0 %v2029_v27 }
 0x1f1   :  { %1383 = vmatprep.subr.bf16.mxu0 %v2037_v17 }
 0x1f2   :  { %1425 = vmatpush1.bf16.msra.mxu1 %v2032_v30 }
 0x1f3   :  { %1426 = vmatprep.subr.bf16.mxu1 %v2040_v31 }
 0x1f4   :  { %1384 = vmatpush2.bf16.msra.mxu0 %v2035_v32 }
 0x1f5   :  { %1385 = vmatprep.subr.bf16.mxu0 %v2043_v33 }
 0x1f6   :  { %1427 = vmatpush2.bf16.msra.mxu1 %v2038_v34 }
 0x1f7   :  { %1428 = vmatprep.subr.bf16.mxu1 %v2046_v24 }
 0x1f8   :  { %1386 = vmatpush2.bf16.msra.mxu0 %v2041_v36 }
 0x1f9   :  { %1387 = vmatprep.subr.bf16.mxu0 %v2049_v37 }
 0x1fa   :  { %1429 = vmatpush2.bf16.msra.mxu1 %v2044_v38 }
 0x1fb   :  { %1430 = vmatprep.subr.bf16.mxu1 %v2052_v39 }
 0x1fc   :  { %1388 = vmatpush2.bf16.msra.mxu0 %v2047_v40 }
 0x1fd   :  { %1389 = vmatprep.subr.bf16.mxu0 %v2055_v12 }
 0x1fe   :  { %1431 = vmatpush2.bf16.msra.mxu1 %v2050_v13 }
 0x1ff   :  { %1432 = vmatprep.subr.bf16.mxu1 %v2058_v42 }
 0x200   :  { %1390 = vmatpush2.bf16.msra.mxu0 %v2053_v43 }
 0x201   :  { %1391 = vmatprep.subr.bf16.mxu0 %v2061_v29 }
 0x202   :  { %1433 = vmatpush2.bf16.msra.mxu1 %v2056_v44 }
 0x203   :  { %1434 = vmatprep.subr.bf16.mxu1 %v2064_v45 }
 0x204   :  { %1392 = vmatpush2.bf16.msra.mxu0 %v2059_v46 }
 0x205   :  { %1393 = vmatprep.subr.bf16.mxu0 %v2067_v47 }
 0x206   :  { %1435 = vmatpush2.bf16.msra.mxu1 %v2062_v48 }
 0x207   :  { %1436 = vmatprep.subr.bf16.mxu1 %v2070_v35 }
 0x208   :  { %1394 = vmatpush2.bf16.msra.mxu0 %v2065_v49 }
 0x209   :  { %1395 = vmatprep.subr.bf16.mxu0 %v2073_v50 }
 0x20a   :  { %1437 = vmatpush2.bf16.msra.mxu1 %v2068_v21 }
 0x20b   :  { %1438 = vmatprep.subr.bf16.mxu1 %v2076_v51 }
 0x20c   :  { %1396 = vmatpush2.bf16.msra.mxu0 %v2071_v41 }
 0x20d   :  { %1397 = vmatprep.subr.bf16.mxu0 %v2079_v53 }
 0x20e   :  { %1439 = vmatpush2.bf16.msra.mxu1 %v2074_v54 }
 0x20f   :  { %1440 = vmatprep.subr.bf16.mxu1 %v2082_v28 }
 0x210   :  { %1398 = vmatpush2.bf16.msra.mxu0 %v2077_v56 }
 0x212   :  { %1441 = vmatpush2.bf16.msra.mxu1 %v2080_v57 }
 0x213   :  { %1400 = vmatmul.mubr.bf16.vlgmr.msra.gmra.mxu0 %v2310_v52  ;;  %v636_v52 = vrot.slane %v2242_v4, %v627_v61 }
 0x215   :  { %1443 = vmatmul.mubr.bf16.vlgmr.msra.gmra.mxu1 %v2313_v55 }
 0x293   :  { %v1315_v58 = vpop.f32.mrf.mxu0 }
 0x294   :  { %v1316_v10 = vadd.f32 %v1315_v58, %v628_v2 }
 0x295   :  { %v1317_v59 = vpop.f32.mrf.mxu0  ;;  %v1358_v60 = vpop.f32.mrf.mxu1 }
 0x296   :  { %v1318_v7 = vadd.f32 %v1317_v59, %v632_v63  ;;  %v2325_v18 = vadd.f32 %v1358_v60, %v1316_v10 }
 0x297   :  { %v1319_v62 = vpop.f32.mrf.mxu0  ;;  %v1360_v0 = vpop.f32.mrf.mxu1 }
 0x298   :  { %v2322_v14 = vadd.f32 %v1360_v0, %v1318_v7  ;;  %v1320_v55 = vadd.f32 %v1319_v62, %v628_v2  ;;  %v1465_v32 = vmul.f32 %v2325_v18, %v2325_v18 }
 0x299   :  { %v1321_v6 = vpop.f32.mrf.mxu0  ;;  %v1362_v8 = vpop.f32.mrf.mxu1 }
 0x29a   :  { %v1322_v11 = vadd.f32 %v1321_v6, %v632_v63  ;;  %v1466_v23 = vmul.f32 %v2322_v14, %v2322_v14  ;;  %v2331_v25 = vadd.f32 %v1362_v8, %v1320_v55  ;;  %v1453_v17 = vadd.f32 %v2322_v14, %v2325_v18 }
 0x29b   :  { %v1364_v15 = vpop.f32.mrf.mxu1 }
 0x29c   :  { %v2327_v19 = vadd.f32 %v1364_v15, %v1322_v11  ;;  %v1469_v40 = vmul.f32 %v2331_v25, %v2331_v25  ;;  %v1473_v43 = vadd.f32 %v1466_v23, %v1465_v32  ;;  %v1495_v11 = vsub.s32 4, %v2237_v1 }
 0x29e   :  { %v1470_v33 = vmul.f32 %v2327_v19, %v2327_v19  ;;  %v1458_v12 = vadd.f32 %v2327_v19, %v2331_v25  ;;  %v1496_v55 = vrot.slane %v2240_v3, %v1495_v11  ;;  %v1500_v15 = vrot.slane %v2244_v5, %v1495_v11 }
 0x2a0   :  { %v1478_v21 = vadd.f32 %v1470_v33, %v1469_v40 }
 0x2d3   :  { %v1401_v20 = vpop.f32.mrf.mxu0 }
 0x2d4   :  { %v1402_v22 = vadd.f32 %v1401_v20, %v636_v52  ;;  %v1508_v20 = vrot.slane %v2249_v9, %v1495_v11 }
 0x2d5   :  { %v1444_v26 = vpop.f32.mrf.mxu1  ;;  %v1403_v27 = vpop.f32.mrf.mxu0 }
 0x2d6   :  { %v2335_v30 = vadd.f32 %v1444_v26, %v1402_v22  ;;  %v1404_v31 = vadd.f32 %v1403_v27, %v640_v16  ;;  %v1575_v22 = vsub.s32 6, %v2237_v1 }
 0x2d7   :  { %v1446_v34 = vpop.f32.mrf.mxu1  ;;  %v1405_v24 = vpop.f32.mrf.mxu0 }
 0x2d8   :  { %v1467_v36 = vmul.f32 %v2335_v30, %v2335_v30  ;;  %v2343_v37 = vadd.f32 %v1446_v34, %v1404_v31  ;;  %v1406_v38 = vadd.f32 %v1405_v24, %v636_v52  ;;  %v1454_v39 = vadd.f32 %v1453_v17, %v2335_v30 }
 0x2d9   :  { %v1448_v13 = vpop.f32.mrf.mxu1  ;;  %v1407_v42 = vpop.f32.mrf.mxu0  ;;  %v1535_v52 = vsub.s32 5, %v2237_v1 }
 0x2da   :  { %v2350_v29 = vadd.f32 %v1448_v13, %v1406_v38  ;;  %v1408_v44 = vadd.f32 %v1407_v42, %v640_v16  ;;  %v1455_v45 = vadd.f32 %v1454_v39, %v2343_v37  ;;  %v1468_v46 = vmul.f32 %v2343_v37, %v2343_v37 }
 0x2db   :  { %v1450_v47 = vpop.f32.mrf.mxu1  ;;  %v1474_v48 = vadd.f32 %v1473_v43, %v1467_v36  ;;  %v1504_v16 = vrot.slane %v2242_v4, %v1495_v11  ;;  %v1536_v26 = vrot.slane %v2240_v3, %v1535_v52  ;;  %v1540_v27 = vrot.slane %v2244_v5, %v1535_v52 }
 0x2dc   :  { %v1471_v35 = vmul.f32 %v2350_v29, %v2350_v29  ;;  %v2357_v49 = vadd.f32 %v1450_v47, %v1408_v44  ;;  %1456 = vadd.xlane.f32.xlu0 %v1455_v45  ;;  %v1459_v50 = vadd.f32 %v1458_v12, %v2350_v29  ;;  %v1544_v34 = vrot.slane %v2242_v4, %v1535_v52 }
 0x2dd   :  { %v1475_v51 = vadd.f32 %v1474_v48, %v1468_v46  ;;  %v1548_v24 = vrot.slane %v2249_v9, %v1535_v52  ;;  %v1576_v36 = vrot.slane %v2240_v3, %v1575_v22  ;;  %v1580_v38 = vrot.slane %v2244_v5, %v1575_v22 }
 0x2de   :  { %v1460_v41 = vadd.f32 %v1459_v50, %v2357_v49  ;;  %v1472_v53 = vmul.f32 %v2357_v49, %v2357_v49  ;;  %v1479_v54 = vadd.f32 %v1478_v21, %v1471_v35 }
 0x2df   :  { %1476 = vadd.xlane.f32.xlu1 %v1475_v51 }
 0x2e0   :  { %1461 = vadd.xlane.f32.xlu0 %v1460_v41  ;;  %v1480_v28 = vadd.f32 %v1479_v54, %v1472_v53 }
 0x2e3   :  { %1481 = vadd.xlane.f32.xlu1 %v1480_v28 }
 0x365   :  { %v1457_v56 = vpop.xlane.xlu0 %1456 }
 0x366   :  { %v1463_v57 = vmul.f32 0.001953125, %v1457_v56 }
 0x368   :  { %v1477_v58 = vpop.xlane.xlu1 %1476  ;;  %v1485_v59 = vmul.f32 %v1463_v57, %v1463_v57 }
 0x369   :  { %v1483_v60 = vmul.f32 0.001953125, %v1477_v58  ;;  %v1462_v61 = vpop.xlane.xlu0 %1461 }
 0x36a   :  { %v1464_v62 = vmul.f32 0.001953125, %v1462_v61 }
 0x36b   :  { %v1487_v63 = vsub.f32 %v1483_v60, %v1485_v59 }
 0x36c   :  { %v1482_v0 = vpop.xlane.xlu1 %1481  ;;  %v1486_v2 = vmul.f32 %v1464_v62, %v1464_v62 }
 0x36d   :  { %v1489_v6 = vadd.f32 1e-05, %v1487_v63  ;;  %v1484_v7 = vmul.f32 0.001953125, %v1482_v0 }
 0x36f   :  { %2087 = vrsqrt.f32 %v1489_v6  ;;  %v1488_v8 = vsub.f32 %v1484_v7, %v1486_v2 }
 0x371   :  { %v1490_v10 = vadd.f32 1e-05, %v1488_v8 }
 0x373   :  { %2089 = vrsqrt.f32 %v1490_v10 }
 0x37c   :  { %v2088_v23 = vpop.eup %2087 }
 0x37d   :  { %v1509_v17 = vmul.f32 %v2088_v23, %v1496_v55  ;;  %v1510_v31 = vmul.f32 %v2088_v23, %v1500_v15  ;;  %v1511_v32 = vmul.f32 %v2088_v23, %v1504_v16  ;;  %v1512_v33 = vmul.f32 %v2088_v23, %v1508_v20 }
 0x37f   :  { %v1517_v39 = vmul.f32 %v1509_v17, %v2325_v18  ;;  %v1518_v40 = vmul.f32 %v1510_v31, %v2322_v14  ;;  %v1519_v12 = vmul.f32 %v1511_v32, %v2335_v30  ;;  %v1520_v13 = vmul.f32 %v1512_v33, %v2343_v37 }
 0x380   :  { %v2090_v42 = vpop.eup %2089  ;;  %v1525_v43 = vmul.f32 %v1509_v17, %v1463_v57  ;;  %v1526_v44 = vmul.f32 %v1510_v31, %v1463_v57  ;;  %v1527_v45 = vmul.f32 %v1511_v32, %v1463_v57  ;;  %v1528_v46 = vmul.f32 %v1512_v33, %v1463_v57 }
 0x381   :  { %v1513_v47 = vmul.f32 %v2090_v42, %v1496_v55  ;;  %v1514_v48 = vmul.f32 %v2090_v42, %v1500_v15  ;;  %v1515_v35 = vmul.f32 %v2090_v42, %v1504_v16  ;;  %v1516_v50 = vmul.f32 %v2090_v42, %v1508_v20 }
 0x382   :  { %v1549_v21 = vsub.f32 %v1536_v26, %v1525_v43  ;;  %v1550_v51 = vsub.f32 %v1540_v27, %v1526_v44  ;;  %v1551_v5 = vsub.f32 %v1544_v34, %v1527_v45  ;;  %v1552_v41 = vsub.f32 %v1548_v24, %v1528_v46 }
 0x383   :  { %v1584_v18 = vrot.slane %v2242_v4, %v1575_v22  ;;  %v1521_v14 = vmul.f32 %v1513_v47, %v2331_v25  ;;  %v1522_v30 = vmul.f32 %v1514_v48, %v2327_v19  ;;  %v1523_v37 = vmul.f32 %v1515_v35, %v2350_v29 }
 0x384   :  { %v1557_v53 = vadd.f32 %v1549_v21, %v1517_v39  ;;  %v1558_v54 = vadd.f32 %v1550_v51, %v1518_v40  ;;  %v1559_v28 = vadd.f32 %v1551_v5, %v1519_v12  ;;  %v1560_v56 = vadd.f32 %v1552_v41, %v1520_v13 }
 0x385   :  { %v1529_v57 = vmul.f32 %v1513_v47, %v1464_v62  ;;  %v1530_v58 = vmul.f32 %v1514_v48, %v1464_v62  ;;  %v1531_v59 = vmul.f32 %v1515_v35, %v1464_v62  ;;  %v1532_v60 = vmul.f32 %v1516_v50, %v1464_v62 }
 0x386   :  { %v1565_v61 = vmax.f32 %v1557_v53, 0.0  ;;  %v1566_v63 = vmax.f32 %v1558_v54, 0.0  ;;  %v1567_v0 = vmax.f32 %v1559_v28, 0.0  ;;  %v1524_v2 = vmul.f32 %v1516_v50, %v2357_v49 }
 0x387   :  { %v1553_v4 = vsub.f32 %v1536_v26, %v1529_v57  ;;  %v1554_v6 = vsub.f32 %v1540_v27, %v1530_v58  ;;  %v1555_v25 = vsub.f32 %v1544_v34, %v1531_v59  ;;  %v1556_v7 = vsub.f32 %v1548_v24, %v1532_v60 }
 0x388   :  { %v1568_v19 = vmax.f32 %v1560_v56, 0.0  ;;  %v1588_v29 = vrot.slane %v2249_v9, %v1575_v22  ;;  %v1589_v8 = vmul.f32 %v1576_v36, %v1565_v61  ;;  %v1590_v10 = vmul.f32 %v1580_v38, %v1566_v63 }
 0x389   :  { %v1561_v11 = vadd.f32 %v1553_v4, %v1521_v14  ;;  %v1562_v52 = vadd.f32 %v1554_v6, %v1522_v30  ;;  %v1563_v55 = vadd.f32 %v1555_v25, %v1523_v37  ;;  %v1564_v15 = vadd.f32 %v1556_v7, %v1524_v2 }
 0x38a   :  { %v1591_v16 = vmul.f32 %v1584_v18, %v1567_v0  ;;  %v1597_v62 = vadd.f32 %v1590_v10, %v1589_v8  ;;  %v1592_v31 = vmul.f32 %v1588_v29, %v1568_v19  ;;  %v1609_v40 = vsub.s32 7, %v2237_v1 }
 0x38b   :  { %v1569_v20 = vmax.f32 %v1561_v11, 0.0  ;;  %v1570_v23 = vmax.f32 %v1562_v52, 0.0  ;;  %v1571_v17 = vmax.f32 %v1563_v55, 0.0  ;;  %v1572_v26 = vmax.f32 %v1564_v15, 0.0 }
 0x38c   :  { %v1598_v49 = vadd.f32 %v1597_v62, %v1591_v16  ;;  %v1610_v12 = vrot.slane %v2240_v3, %v1609_v40 }
 0x38d   :  { %v1593_v27 = vmul.f32 %v1576_v36, %v1569_v20  ;;  %v1594_v32 = vmul.f32 %v1580_v38, %v1570_v23  ;;  %v1595_v34 = vmul.f32 %v1584_v18, %v1571_v17  ;;  %v1596_v9 = vmul.f32 %v1588_v29, %v1572_v26 }
 0x38e   :  { %v1599_v33 = vadd.f32 %v1598_v49, %v1592_v31 }
 0x38f   :  { %v1602_v24 = vadd.f32 %v1594_v32, %v1593_v27 }
 0x390   :  { %1600 = vadd.xlane.f32.xlu0 %v1599_v33 }
 0x391   :  { %v1603_v22 = vadd.f32 %v1602_v24, %v1595_v34 }
 0x393   :  { %v1604_v39 = vadd.f32 %v1603_v22, %v1596_v9 }
 0x395   :  { %1605 = vadd.xlane.f32.xlu1 %v1604_v39 }
 0x419   :  { %v1601_v13 = vpop.xlane.xlu0 %1600 }
 0x41a   :  { %v1611_v42 = vadd.f32 %v1610_v12, %v1601_v13 }
 0x41c   :  { %v1832_v43 = vmul.f32 -1.442695, %v1611_v42 }
 0x41e   :  { %2091 = vpow2.f32 %v1832_v43  ;;  %v1606_v44 = vpop.xlane.xlu1 %1605 }
 0x41f   :  { %v1612_v45 = vadd.f32 %v1610_v12, %v1606_v44 }
 0x421   :  { %v1833_v36 = vmul.f32 -1.442695, %v1612_v45 }
 0x423   :  { %2093 = vpow2.f32 %v1833_v36 }
 0x42b   :  { %v2092_v38 = vpop.eup %2091 }
 0x42c   :  { %v1619_v46 = vadd.f32 1.0, %v2092_v38 }
 0x42e   :  { %2095 = vrcp.f32 %v1619_v46 }
 0x430   :  { %v2094_v47 = vpop.eup %2093 }
 0x431   :  { %v1620_v48 = vadd.f32 1.0, %v2094_v47 }
 0x433   :  { %2097 = vrcp.f32 %v1620_v48 }
 0x43b   :  { %v2096_v35 = vpop.eup %2095 }
 0x43c   :  { %1626 = vst.msk [vmem:[#allocation9] sm:$0xff] %vm1625_vm0, %v2096_v35 }
 0x440   :  { %v2098_v1 = vpop.eup %2097 }
 0x443   :  { %v1658_v50 = vld [vmem:[#allocation9] sm:$0xff] }
 0x444   :  { %1659 = vst [vmem:[%s2395_s4] sm:$0xff] %v1658_v50 }
 0x445   :  { %1665 = vsyncpa [#allocation3], 1 }
 0x446   :  { %1666 = vsyncpa [#allocation5], 1 }
 0x447   :  { %1667 = vsyncpa [#allocation8], 1 }

</bundles_post_ra>
